<compile_context>
chip_gen: v7x
topology: tpu7x:2x2x1
jax: 0.10.0
libtpu: 0.0.40
codegen_flags: <defaults>
</compile_context>

<pallas_src>
import jax
import jax.numpy as jnp
from jax.experimental import pallas as pl
from jax.experimental.pallas import tpu as pltpu

EPS = 1e-5


def residual_block_kernel(x_ref, b1_ref, g1_ref, be1_ref,
                          wse1_ref, bse1_ref, wse2_ref, bse2_ref,
                          b2_ref, g2_ref, be2_ref, ec_ref, ect_ref,
                          o_ref, pad_ref):
    N, hp2, WC = pad_ref.shape
    H = hp2 - 2
    C = ec_ref.shape[1]
    W = WC // C
    NH = N * H
    NHW = NH * W

    ec = ec_ref[...]      # (W*C, C) f32 0/1: packed (x,c) lanes -> channel c
    ect = ect_ref[...]    # (C, W*C) f32 0/1: channel c -> packed (x,c) lanes

    def conv3x3(b_ref):
        # One lane-dense matmul per kernel row dy; the three horizontal taps
        # and the SAME zero padding live inside the banded weight, so each
        # operand is a plain full-width row slab (no im2col copy, no masked
        # tap stores).  bf16 operands, f32 accumulation.
        acc = jnp.zeros((NH, WC), jnp.float32)
        for dy in range(3):
            rows = pad_ref[:, dy:dy + H, :].reshape(NH, WC)
            acc += jnp.dot(rows.astype(b_ref.dtype), b_ref[dy],
                           preferred_element_type=jnp.float32)
        return acc                                               # (NH, W*C)

    def batchnorm(y, gamma, beta):
        # Single-pass biased batch statistics (PyTorch training-mode forward).
        # Per-channel packing/unpacking uses tiny 0/1 matmuls; BN itself is a
        # single fused scale+shift over the activation (2 full-size VPU ops).
        csum = jnp.sum(y, axis=0, keepdims=True)                 # (1, W*C)
        csumsq = jnp.sum(y * y, axis=0, keepdims=True)
        mean = jnp.dot(csum, ec, preferred_element_type=jnp.float32) / NHW
        msq = jnp.dot(csumsq, ec, preferred_element_type=jnp.float32) / NHW
        var = jnp.maximum(msq - mean * mean, 0.0)
        scale = gamma * jax.lax.rsqrt(var + EPS)                 # (1, C)
        shift = beta - mean * scale                              # (1, C)
        scale_row = jnp.dot(scale, ect, preferred_element_type=jnp.float32)
        shift_row = jnp.dot(shift, ect, preferred_element_type=jnp.float32)
        return y * scale_row + shift_row                         # (NH, W*C)

    # Zero only the one-row top/bottom borders (whole lane-dense rows).  There
    # are no left/right zero columns: horizontal padding is in the weights.
    zrow = jnp.zeros((N, 1, WC), pad_ref.dtype)
    pad_ref[:, 0:1, :] = zrow
    pad_ref[:, H + 1:H + 2, :] = zrow

    # ---- conv1 + BN1 + ReLU (conv bias omitted: cancels in batch-stat BN) ----
    pad_ref[:, 1:H + 1, :] = x_ref[...].reshape(N, H, WC)
    y = jnp.maximum(batchnorm(conv3x3(b1_ref), g1_ref[...], be1_ref[...]), 0.0)

    # ---- SqueezeAndExcite (tiny FCs kept in f32: latency work) ----
    y3 = y.reshape(N, H, WC)
    rowsum = jnp.sum(y3, axis=1)                                 # (N, W*C)
    pooled = jnp.dot(rowsum, ec, preferred_element_type=jnp.float32) / (H * W)
    h = jnp.maximum(jnp.dot(pooled, wse1_ref[...],
                            preferred_element_type=jnp.float32) + bse1_ref[...],
                    0.0)
    s = jax.nn.sigmoid(jnp.dot(h, wse2_ref[...],
                               preferred_element_type=jnp.float32) + bse2_ref[...])
    s_row = jnp.dot(s, ect, preferred_element_type=jnp.float32)  # (N, W*C)
    y = (y3 * s_row[:, None, :]).reshape(NH, WC)

    # ---- conv2 + BN2 (bias omitted again) ----
    pad_ref[:, 1:H + 1, :] = y.reshape(N, H, WC)
    z = batchnorm(conv3x3(b2_ref), g2_ref[...], be2_ref[...])

    # ---- residual add + ReLU; x is re-read here (not live across the convs),
    # stored lane-dense (last dim W*C is a multiple of 128 -> unmasked vst) ----
    o_ref[...] = jnp.maximum(x_ref[...] + z, 0.0)


def _banded_conv_weight(w_hwio, width):
    """(3,3,C,C) HWIO conv weight -> (3, width*C, width*C) bf16 banded matrices.

    For kernel row dy:  B_dy[xin*C + ci, xo*C + co] = W[dy, xin-xo+1, ci, co]
    when |xin - xo| <= 1 and 0 otherwise.  Multiplying a (rows, width*C)
    activation slab by B_dy applies all three horizontal taps of that kernel
    row, with SAME zero padding, in a single lane-dense MXU matmul.
    """
    bands = []
    for dy in range(3):
        b = sum(jnp.kron(jnp.eye(width, k=1 - dx, dtype=w_hwio.dtype),
                         w_hwio[dy, dx]) for dx in range(3))
        bands.append(b)
    return jnp.stack(bands).astype(jnp.bfloat16)


def residual_block(x_nchw, params):
    (w1, b1, g1, be1, wse1, bse1, wse2, bse2, w2, b2, g2, be2) = params
    # Conv biases are per-channel constants; with BatchNorm using BATCH
    # statistics (training-mode forward, as in the PyTorch module) they cancel
    # exactly inside the following BN, so the kernel omits them.  NOTE: this
    # is only valid for batch-stat BN, not for eval/running statistics.
    del b1, b2

    x = jnp.transpose(x_nchw, (0, 2, 3, 1)).astype(jnp.float32)  # NCHW -> NHWC
    N, H, W, C = x.shape
    r = wse1.shape[1]
    x2d = x.reshape(N * H, W * C)                                # lane-dense slab

    b1c = _banded_conv_weight(w1, W)                             # (3, W*C, W*C)
    b2c = _banded_conv_weight(w2, W)
    # Constant 0/1 pack/unpack matrices for per-channel stats in packed layout.
    ec = jnp.tile(jnp.eye(C, dtype=jnp.float32), (W, 1))         # (W*C, C)
    ect = jnp.tile(jnp.eye(C, dtype=jnp.float32), (1, W))        # (C, W*C)

    args = (x2d, b1c, g1, be1, wse1, bse1, wse2, bse2, b2c, g2, be2, ec, ect)

    io_bytes = sum(a.size * a.dtype.itemsize for a in args) + x2d.size * 4
    scratch_bytes = N * (H + 2) * W * C * 4                      # f32 pad slab
    need = 2 * (io_bytes + scratch_bytes) + (4 << 20)
    try:
        cap = int(getattr(pltpu.get_tpu_info(), "vmem_capacity_bytes", 64 << 20))
    except Exception:  # conservative default: v7x has 64 MiB per TensorCore
        cap = 64 << 20
    vmem_limit = int(min(max(need, 32 << 20), (cap * 3) // 4))

    cost = pl.CostEstimate(
        flops=2 * 2 * 3 * N * H * (W * C) ** 2 + 4 * N * C * r
        + 12 * N * H * W * C,
        transcendentals=2 * N * C,
        bytes_accessed=io_bytes,
    )

    out2d = pl.pallas_call(
        residual_block_kernel,
        out_shape=jax.ShapeDtypeStruct((N * H, W * C), jnp.float32),
        in_specs=[pl.BlockSpec(memory_space=pltpu.MemorySpace.VMEM)] * len(args),
        out_specs=pl.BlockSpec(memory_space=pltpu.MemorySpace.VMEM),
        scratch_shapes=[
            pltpu.VMEM((N, H + 2, W * C), jnp.float32),          # padded rows
        ],
        compiler_params=pltpu.CompilerParams(vmem_limit_bytes=vmem_limit),
        cost_estimate=cost,
    )(*args)

    out = out2d.reshape(N, H, W, C)
    return jnp.transpose(out, (0, 3, 1, 2))                      # NHWC -> NCHW


def init_params(key, channels, reduction=16):
    assert channels % reduction == 0
    r = channels // reduction
    ks = jax.random.split(key, 12)
    w1 = 0.1 * jax.random.normal(ks[0], (3, 3, channels, channels), jnp.float32)
    b1 = 0.1 * jax.random.normal(ks[1], (1, channels), jnp.float32)
    g1 = 1.0 + 0.05 * jax.random.normal(ks[2], (1, channels), jnp.float32)
    be1 = 0.05 * jax.random.normal(ks[3], (1, channels), jnp.float32)
    wse1 = 0.2 * jax.random.normal(ks[4], (channels, r), jnp.float32)
    bse1 = 0.1 * jax.random.normal(ks[5], (1, r), jnp.float32)
    wse2 = 0.2 * jax.random.normal(ks[6], (r, channels), jnp.float32)
    bse2 = 0.1 * jax.random.normal(ks[7], (1, channels), jnp.float32)
    w2 = 0.1 * jax.random.normal(ks[8], (3, 3, channels, channels), jnp.float32)
    b2 = 0.1 * jax.random.normal(ks[9], (1, channels), jnp.float32)
    g2 = 1.0 + 0.05 * jax.random.normal(ks[10], (1, channels), jnp.float32)
    be2 = 0.05 * jax.random.normal(ks[11], (1, channels), jnp.float32)
    return (w1, b1, g1, be1, wse1, bse1, wse2, bse2, w2, b2, g2, be2)


def residual_block_ref(x_nchw, params):
    # Pure-JAX reference: same math as the PyTorch module (conv biases kept),
    # with conv operands in bf16 / f32 accumulation to mirror MXU precision.
    (w1, b1, g1, be1, wse1, bse1, wse2, bse2, w2, b2, g2, be2) = params
    x = jnp.transpose(x_nchw, (0, 2, 3, 1)).astype(jnp.float32)

    def conv(inp, w, b):
        y = jax.lax.conv_general_dilated(
            inp.astype(jnp.bfloat16), w.astype(jnp.bfloat16),
            window_strides=(1, 1), padding="SAME",
            dimension_numbers=("NHWC", "HWIO", "NHWC"),
            preferred_element_type=jnp.float32)
        return y + b.reshape(1, 1, 1, -1)

    def bn(y, g, be):
        mean = jnp.mean(y, axis=(0, 1, 2), keepdims=True)
        var = jnp.mean((y - mean) ** 2, axis=(0, 1, 2), keepdims=True)
        return (y - mean) * jax.lax.rsqrt(var + EPS) * g.reshape(1, 1, 1, -1) \
            + be.reshape(1, 1, 1, -1)

    y = jnp.maximum(bn(conv(x, w1, b1), g1, be1), 0.0)
    pooled = jnp.mean(y, axis=(1, 2))
    h = jnp.maximum(pooled @ wse1 + bse1, 0.0)
    s = jax.nn.sigmoid(h @ wse2 + bse2)
    y = y * s.reshape(s.shape[0], 1, 1, -1)
    z = bn(conv(y, w2, b2), g2, be2)
    out = jnp.maximum(x + z, 0.0)
    return jnp.transpose(out, (0, 3, 1, 2))


if __name__ == "__main__":
    key = jax.random.PRNGKey(0)
    kx, kp = jax.random.split(key)

    N, C, H, W = 2, 32, 8, 8  # C must be divisible by the SE reduction (16)
    x = jax.random.normal(kx, (N, C, H, W), jnp.float32)
    params = init_params(kp, C)

    out = residual_block(x, params)
    out = jax.block_until_ready(out)

    ref = residual_block_ref(x, params)
    err = float(jnp.max(jnp.abs(out - ref)))
    assert out.shape == (N, C, H, W)
    # Tolerance accounts for bf16 matmul-operand rounding (f32 accumulation)
    # and reduction-order differences between the banded conv and XLA's conv.
    assert err < 1e-2, f"max abs error {err}"
    print("KERNEL_OK")
</pallas_src>

<mosaic_0001>
module attributes {stable_mosaic.version = 11 : i64} {
  func.func @residual_block_kernel(%arg0: memref<16x256xf32, #tpu.memory_space<vmem>>, %arg1: memref<3x256x256xbf16, #tpu.memory_space<vmem>>, %arg2: memref<1x32xf32, #tpu.memory_space<vmem>>, %arg3: memref<1x32xf32, #tpu.memory_space<vmem>>, %arg4: memref<32x2xf32, #tpu.memory_space<vmem>>, %arg5: memref<1x2xf32, #tpu.memory_space<vmem>>, %arg6: memref<2x32xf32, #tpu.memory_space<vmem>>, %arg7: memref<1x32xf32, #tpu.memory_space<vmem>>, %arg8: memref<3x256x256xbf16, #tpu.memory_space<vmem>>, %arg9: memref<1x32xf32, #tpu.memory_space<vmem>>, %arg10: memref<1x32xf32, #tpu.memory_space<vmem>>, %arg11: memref<256x32xf32, #tpu.memory_space<vmem>>, %arg12: memref<32x256xf32, #tpu.memory_space<vmem>>, %arg13: memref<16x256xf32, #tpu.memory_space<vmem>>, %arg14: memref<2x10x256xf32, #tpu.memory_space<vmem>>) attributes {dimension_semantics = [], scalar_prefetch = 0 : i64, scratch_operands = 1 : i64, tpu.core_type = #tpu.core_type<tc>} {
    %c0 = arith.constant 0 : index
    %c0_0 = arith.constant 0 : index
    %0 = vector.load %arg11[%c0, %c0_0] : memref<256x32xf32, #tpu.memory_space<vmem>>, vector<256x32xf32>
    %c0_1 = arith.constant 0 : index
    %c0_2 = arith.constant 0 : index
    %1 = vector.load %arg12[%c0_1, %c0_2] : memref<32x256xf32, #tpu.memory_space<vmem>>, vector<32x256xf32>
    %cst = arith.constant 0.000000e+00 : f32
    %2 = vector.broadcast %cst : f32 to vector<2x1x256xf32>
    %c0_3 = arith.constant 0 : index
    %c0_4 = arith.constant 0 : index
    %c0_5 = arith.constant 0 : index
    %3 = vector.load %arg14[%c0_3, %c0_4, %c0_5] : memref<2x10x256xf32, #tpu.memory_space<vmem>>, vector<2x1x256xf32>
    tpu.vector_store %arg14[%c0_3, %c0_4, %c0_5], %2 {strides = array<i32>} : memref<2x10x256xf32, #tpu.memory_space<vmem>>, vector<2x1x256xf32>,
    %c0_6 = arith.constant 0 : index
    %c9 = arith.constant 9 : index
    %c0_7 = arith.constant 0 : index
    %4 = vector.load %arg14[%c0_6, %c9, %c0_7] : memref<2x10x256xf32, #tpu.memory_space<vmem>>, vector<2x1x256xf32>
    tpu.vector_store %arg14[%c0_6, %c9, %c0_7], %2 {strides = array<i32>} : memref<2x10x256xf32, #tpu.memory_space<vmem>>, vector<2x1x256xf32>,
    %c0_8 = arith.constant 0 : index
    %c0_9 = arith.constant 0 : index
    %5 = vector.load %arg0[%c0_8, %c0_9] : memref<16x256xf32, #tpu.memory_space<vmem>>, vector<16x256xf32>
    %6 = vector.shape_cast %5 : vector<16x256xf32> to vector<2x8x256xf32>
    %c0_10 = arith.constant 0 : index
    %c1 = arith.constant 1 : index
    %c0_11 = arith.constant 0 : index
    %7 = vector.load %arg14[%c0_10, %c1, %c0_11] : memref<2x10x256xf32, #tpu.memory_space<vmem>>, vector<2x8x256xf32>
    tpu.vector_store %arg14[%c0_10, %c1, %c0_11], %6 {strides = array<i32>} : memref<2x10x256xf32, #tpu.memory_space<vmem>>, vector<2x8x256xf32>,
    %cst_12 = arith.constant 0.000000e+00 : f32
    %8 = vector.broadcast %cst_12 : f32 to vector<16x256xf32>
    %c0_13 = arith.constant 0 : index
    %c0_14 = arith.constant 0 : index
    %c0_15 = arith.constant 0 : index
    %9 = vector.load %arg14[%c0_13, %c0_14, %c0_15] : memref<2x10x256xf32, #tpu.memory_space<vmem>>, vector<2x8x256xf32>
    %10 = vector.shape_cast %9 : vector<2x8x256xf32> to vector<16x256xf32>
    %11 = arith.truncf %10 : vector<16x256xf32> to vector<16x256xbf16>
    %c0_16 = arith.constant 0 : index
    %c0_17 = arith.constant 0 : index
    %c0_18 = arith.constant 0 : index
    %12 = vector.load %arg1[%c0_16, %c0_17, %c0_18] : memref<3x256x256xbf16, #tpu.memory_space<vmem>>, vector<1x256x256xbf16>
    %13 = vector.shape_cast %12 : vector<1x256x256xbf16> to vector<256x256xbf16>
    %cst_19 = arith.constant dense<0.000000e+00> : vector<16x256xf32>
    %14 = tpu.matmul %11, %13, %cst_19 {dimension_numbers = #tpu.dot_dimension_numbers<[1], [0], [0], [1], [0, 0, 1, 1], [], []>} : vector<16x256xbf16>, vector<256x256xbf16>, vector<16x256xf32> -> vector<16x256xf32>
    %15 = arith.addf %8, %14 : vector<16x256xf32>
    %c0_20 = arith.constant 0 : index
    %c1_21 = arith.constant 1 : index
    %c0_22 = arith.constant 0 : index
    %16 = vector.load %arg14[%c0_20, %c1_21, %c0_22] : memref<2x10x256xf32, #tpu.memory_space<vmem>>, vector<2x8x256xf32>
    %17 = vector.shape_cast %16 : vector<2x8x256xf32> to vector<16x256xf32>
    %18 = arith.truncf %17 : vector<16x256xf32> to vector<16x256xbf16>
    %c1_23 = arith.constant 1 : index
    %c0_24 = arith.constant 0 : index
    %c0_25 = arith.constant 0 : index
    %19 = vector.load %arg1[%c1_23, %c0_24, %c0_25] : memref<3x256x256xbf16, #tpu.memory_space<vmem>>, vector<1x256x256xbf16>
    %20 = vector.shape_cast %19 : vector<1x256x256xbf16> to vector<256x256xbf16>
    %cst_26 = arith.constant dense<0.000000e+00> : vector<16x256xf32>
    %21 = tpu.matmul %18, %20, %cst_26 {dimension_numbers = #tpu.dot_dimension_numbers<[1], [0], [0], [1], [0, 0, 1, 1], [], []>} : vector<16x256xbf16>, vector<256x256xbf16>, vector<16x256xf32> -> vector<16x256xf32>
    %22 = arith.addf %15, %21 : vector<16x256xf32>
    %c0_27 = arith.constant 0 : index
    %c2 = arith.constant 2 : index
    %c0_28 = arith.constant 0 : index
    %23 = vector.load %arg14[%c0_27, %c2, %c0_28] : memref<2x10x256xf32, #tpu.memory_space<vmem>>, vector<2x8x256xf32>
    %24 = vector.shape_cast %23 : vector<2x8x256xf32> to vector<16x256xf32>
    %25 = arith.truncf %24 : vector<16x256xf32> to vector<16x256xbf16>
    %c2_29 = arith.constant 2 : index
    %c0_30 = arith.constant 0 : index
    %c0_31 = arith.constant 0 : index
    %26 = vector.load %arg1[%c2_29, %c0_30, %c0_31] : memref<3x256x256xbf16, #tpu.memory_space<vmem>>, vector<1x256x256xbf16>
    %27 = vector.shape_cast %26 : vector<1x256x256xbf16> to vector<256x256xbf16>
    %cst_32 = arith.constant dense<0.000000e+00> : vector<16x256xf32>
    %28 = tpu.matmul %25, %27, %cst_32 {dimension_numbers = #tpu.dot_dimension_numbers<[1], [0], [0], [1], [0, 0, 1, 1], [], []>} : vector<16x256xbf16>, vector<256x256xbf16>, vector<16x256xf32> -> vector<16x256xf32>
    %29 = arith.addf %22, %28 : vector<16x256xf32>
    %c0_33 = arith.constant 0 : index
    %c0_34 = arith.constant 0 : index
    %30 = vector.load %arg2[%c0_33, %c0_34] : memref<1x32xf32, #tpu.memory_space<vmem>>, vector<1x32xf32>
    %c0_35 = arith.constant 0 : index
    %c0_36 = arith.constant 0 : index
    %31 = vector.load %arg3[%c0_35, %c0_36] : memref<1x32xf32, #tpu.memory_space<vmem>>, vector<1x32xf32>
    %cst_37 = arith.constant dense<0.000000e+00> : vector<256xf32>
    %32 = vector.multi_reduction <add>, %29, %cst_37 [0] : vector<16x256xf32> to vector<256xf32>
    %33 = vector.shape_cast %32 : vector<256xf32> to vector<1x256xf32>
    %34 = arith.mulf %29, %29 : vector<16x256xf32>
    %cst_38 = arith.constant dense<0.000000e+00> : vector<256xf32>
    %35 = vector.multi_reduction <add>, %34, %cst_38 [0] : vector<16x256xf32> to vector<256xf32>
    %36 = vector.shape_cast %35 : vector<256xf32> to vector<1x256xf32>
    %cst_39 = arith.constant dense<0.000000e+00> : vector<1x32xf32>
    %37 = tpu.matmul %33, %0, %cst_39 {dimension_numbers = #tpu.dot_dimension_numbers<[1], [0], [0], [1], [0, 0, 1, 1], [], []>} : vector<1x256xf32>, vector<256x32xf32>, vector<1x32xf32> -> vector<1x32xf32>
    %cst_40 = arith.constant 1.280000e+02 : f32
    %38 = vector.broadcast %cst_40 : f32 to vector<1x32xf32>
    %39 = arith.divf %37, %38 : vector<1x32xf32>
    %cst_41 = arith.constant dense<0.000000e+00> : vector<1x32xf32>
    %40 = tpu.matmul %36, %0, %cst_41 {dimension_numbers = #tpu.dot_dimension_numbers<[1], [0], [0], [1], [0, 0, 1, 1], [], []>} : vector<1x256xf32>, vector<256x32xf32>, vector<1x32xf32> -> vector<1x32xf32>
    %cst_42 = arith.constant 1.280000e+02 : f32
    %41 = vector.broadcast %cst_42 : f32 to vector<1x32xf32>
    %42 = arith.divf %40, %41 : vector<1x32xf32>
    %43 = arith.mulf %39, %39 : vector<1x32xf32>
    %44 = arith.subf %42, %43 : vector<1x32xf32>
    %cst_43 = arith.constant 0.000000e+00 : f32
    %45 = vector.broadcast %cst_43 : f32 to vector<1x32xf32>
    %46 = arith.maximumf %44, %45 : vector<1x32xf32>
    %cst_44 = arith.constant 9.99999974E-6 : f32
    %47 = vector.broadcast %cst_44 : f32 to vector<1x32xf32>
    %48 = arith.addf %46, %47 : vector<1x32xf32>
    %49 = math.rsqrt %48 : vector<1x32xf32>
    %50 = arith.mulf %30, %49 : vector<1x32xf32>
    %51 = arith.mulf %39, %50 : vector<1x32xf32>
    %52 = arith.subf %31, %51 : vector<1x32xf32>
    %cst_45 = arith.constant dense<0.000000e+00> : vector<1x256xf32>
    %53 = tpu.matmul %50, %1, %cst_45 {dimension_numbers = #tpu.dot_dimension_numbers<[1], [0], [0], [1], [0, 0, 1, 1], [], []>} : vector<1x32xf32>, vector<32x256xf32>, vector<1x256xf32> -> vector<1x256xf32>
    %cst_46 = arith.constant dense<0.000000e+00> : vector<1x256xf32>
    %54 = tpu.matmul %52, %1, %cst_46 {dimension_numbers = #tpu.dot_dimension_numbers<[1], [0], [0], [1], [0, 0, 1, 1], [], []>} : vector<1x32xf32>, vector<32x256xf32>, vector<1x256xf32> -> vector<1x256xf32>
    %55 = vector.broadcast %53 : vector<1x256xf32> to vector<16x256xf32>
    %56 = arith.mulf %29, %55 : vector<16x256xf32>
    %57 = vector.broadcast %54 : vector<1x256xf32> to vector<16x256xf32>
    %58 = arith.addf %56, %57 : vector<16x256xf32>
    %cst_47 = arith.constant 0.000000e+00 : f32
    %59 = vector.broadcast %cst_47 : f32 to vector<16x256xf32>
    %60 = arith.maximumf %58, %59 : vector<16x256xf32>
    %61 = vector.shape_cast %60 : vector<16x256xf32> to vector<2x8x256xf32>
    %cst_48 = arith.constant dense<0.000000e+00> : vector<2x256xf32>
    %62 = vector.multi_reduction <add>, %61, %cst_48 [1] : vector<2x8x256xf32> to vector<2x256xf32>
    %cst_49 = arith.constant dense<0.000000e+00> : vector<2x32xf32>
    %63 = tpu.matmul %62, %0, %cst_49 {dimension_numbers = #tpu.dot_dimension_numbers<[1], [0], [0], [1], [0, 0, 1, 1], [], []>} : vector<2x256xf32>, vector<256x32xf32>, vector<2x32xf32> -> vector<2x32xf32>
    %cst_50 = arith.constant 6.400000e+01 : f32
    %64 = vector.broadcast %cst_50 : f32 to vector<2x32xf32>
    %65 = arith.divf %63, %64 : vector<2x32xf32>
    %c0_51 = arith.constant 0 : index
    %c0_52 = arith.constant 0 : index
    %66 = vector.load %arg4[%c0_51, %c0_52] : memref<32x2xf32, #tpu.memory_space<vmem>>, vector<32x2xf32>
    %cst_53 = arith.constant dense<0.000000e+00> : vector<2x2xf32>
    %67 = tpu.matmul %65, %66, %cst_53 {dimension_numbers = #tpu.dot_dimension_numbers<[1], [0], [0], [1], [0, 0, 1, 1], [], []>} : vector<2x32xf32>, vector<32x2xf32>, vector<2x2xf32> -> vector<2x2xf32>
    %c0_54 = arith.constant 0 : index
    %c0_55 = arith.constant 0 : index
    %68 = vector.load %arg5[%c0_54, %c0_55] : memref<1x2xf32, #tpu.memory_space<vmem>>, vector<1x2xf32>
    %69 = vector.broadcast %68 : vector<1x2xf32> to vector<2x2xf32>
    %70 = arith.addf %67, %69 : vector<2x2xf32>
    %cst_56 = arith.constant 0.000000e+00 : f32
    %71 = vector.broadcast %cst_56 : f32 to vector<2x2xf32>
    %72 = arith.maximumf %70, %71 : vector<2x2xf32>
    %c0_57 = arith.constant 0 : index
    %c0_58 = arith.constant 0 : index
    %73 = vector.load %arg6[%c0_57, %c0_58] : memref<2x32xf32, #tpu.memory_space<vmem>>, vector<2x32xf32>
    %cst_59 = arith.constant dense<0.000000e+00> : vector<2x32xf32>
    %74 = tpu.matmul %72, %73, %cst_59 {dimension_numbers = #tpu.dot_dimension_numbers<[1], [0], [0], [1], [0, 0, 1, 1], [], []>} : vector<2x2xf32>, vector<2x32xf32>, vector<2x32xf32> -> vector<2x32xf32>
    %c0_60 = arith.constant 0 : index
    %c0_61 = arith.constant 0 : index
    %75 = vector.load %arg7[%c0_60, %c0_61] : memref<1x32xf32, #tpu.memory_space<vmem>>, vector<1x32xf32>
    %76 = vector.broadcast %75 : vector<1x32xf32> to vector<2x32xf32>
    %77 = arith.addf %74, %76 : vector<2x32xf32>
    %78 = arith.negf %77 : vector<2x32xf32>
    %79 = math.exp %78 : vector<2x32xf32>
    %cst_62 = arith.constant 1.000000e+00 : f32
    %80 = vector.broadcast %cst_62 : f32 to vector<2x32xf32>
    %81 = arith.addf %80, %79 : vector<2x32xf32>
    %82 = arith.divf %80, %81 : vector<2x32xf32>
    %cst_63 = arith.constant dense<0.000000e+00> : vector<2x256xf32>
    %83 = tpu.matmul %82, %1, %cst_63 {dimension_numbers = #tpu.dot_dimension_numbers<[1], [0], [0], [1], [0, 0, 1, 1], [], []>} : vector<2x32xf32>, vector<32x256xf32>, vector<2x256xf32> -> vector<2x256xf32>
    %84 = vector.shape_cast %83 : vector<2x256xf32> to vector<2x1x256xf32>
    %85 = vector.broadcast %84 : vector<2x1x256xf32> to vector<2x8x256xf32>
    %86 = arith.mulf %61, %85 : vector<2x8x256xf32>
    %87 = vector.shape_cast %86 : vector<2x8x256xf32> to vector<16x256xf32>
    %88 = vector.shape_cast %87 : vector<16x256xf32> to vector<2x8x256xf32>
    %c0_64 = arith.constant 0 : index
    %c1_65 = arith.constant 1 : index
    %c0_66 = arith.constant 0 : index
    %89 = vector.load %arg14[%c0_64, %c1_65, %c0_66] : memref<2x10x256xf32, #tpu.memory_space<vmem>>, vector<2x8x256xf32>
    tpu.vector_store %arg14[%c0_64, %c1_65, %c0_66], %88 {strides = array<i32>} : memref<2x10x256xf32, #tpu.memory_space<vmem>>, vector<2x8x256xf32>,
    %cst_67 = arith.constant 0.000000e+00 : f32
    %90 = vector.broadcast %cst_67 : f32 to vector<16x256xf32>
    %c0_68 = arith.constant 0 : index
    %c0_69 = arith.constant 0 : index
    %c0_70 = arith.constant 0 : index
    %91 = vector.load %arg14[%c0_68, %c0_69, %c0_70] : memref<2x10x256xf32, #tpu.memory_space<vmem>>, vector<2x8x256xf32>
    %92 = vector.shape_cast %91 : vector<2x8x256xf32> to vector<16x256xf32>
    %93 = arith.truncf %92 : vector<16x256xf32> to vector<16x256xbf16>
    %c0_71 = arith.constant 0 : index
    %c0_72 = arith.constant 0 : index
    %c0_73 = arith.constant 0 : index
    %94 = vector.load %arg8[%c0_71, %c0_72, %c0_73] : memref<3x256x256xbf16, #tpu.memory_space<vmem>>, vector<1x256x256xbf16>
    %95 = vector.shape_cast %94 : vector<1x256x256xbf16> to vector<256x256xbf16>
    %cst_74 = arith.constant dense<0.000000e+00> : vector<16x256xf32>
    %96 = tpu.matmul %93, %95, %cst_74 {dimension_numbers = #tpu.dot_dimension_numbers<[1], [0], [0], [1], [0, 0, 1, 1], [], []>} : vector<16x256xbf16>, vector<256x256xbf16>, vector<16x256xf32> -> vector<16x256xf32>
    %97 = arith.addf %90, %96 : vector<16x256xf32>
    %c0_75 = arith.constant 0 : index
    %c1_76 = arith.constant 1 : index
    %c0_77 = arith.constant 0 : index
    %98 = vector.load %arg14[%c0_75, %c1_76, %c0_77] : memref<2x10x256xf32, #tpu.memory_space<vmem>>, vector<2x8x256xf32>
    %99 = vector.shape_cast %98 : vector<2x8x256xf32> to vector<16x256xf32>
    %100 = arith.truncf %99 : vector<16x256xf32> to vector<16x256xbf16>
    %c1_78 = arith.constant 1 : index
    %c0_79 = arith.constant 0 : index
    %c0_80 = arith.constant 0 : index
    %101 = vector.load %arg8[%c1_78, %c0_79, %c0_80] : memref<3x256x256xbf16, #tpu.memory_space<vmem>>, vector<1x256x256xbf16>
    %102 = vector.shape_cast %101 : vector<1x256x256xbf16> to vector<256x256xbf16>
    %cst_81 = arith.constant dense<0.000000e+00> : vector<16x256xf32>
    %103 = tpu.matmul %100, %102, %cst_81 {dimension_numbers = #tpu.dot_dimension_numbers<[1], [0], [0], [1], [0, 0, 1, 1], [], []>} : vector<16x256xbf16>, vector<256x256xbf16>, vector<16x256xf32> -> vector<16x256xf32>
    %104 = arith.addf %97, %103 : vector<16x256xf32>
    %c0_82 = arith.constant 0 : index
    %c2_83 = arith.constant 2 : index
    %c0_84 = arith.constant 0 : index
    %105 = vector.load %arg14[%c0_82, %c2_83, %c0_84] : memref<2x10x256xf32, #tpu.memory_space<vmem>>, vector<2x8x256xf32>
    %106 = vector.shape_cast %105 : vector<2x8x256xf32> to vector<16x256xf32>
    %107 = arith.truncf %106 : vector<16x256xf32> to vector<16x256xbf16>
    %c2_85 = arith.constant 2 : index
    %c0_86 = arith.constant 0 : index
    %c0_87 = arith.constant 0 : index
    %108 = vector.load %arg8[%c2_85, %c0_86, %c0_87] : memref<3x256x256xbf16, #tpu.memory_space<vmem>>, vector<1x256x256xbf16>
    %109 = vector.shape_cast %108 : vector<1x256x256xbf16> to vector<256x256xbf16>
    %cst_88 = arith.constant dense<0.000000e+00> : vector<16x256xf32>
    %110 = tpu.matmul %107, %109, %cst_88 {dimension_numbers = #tpu.dot_dimension_numbers<[1], [0], [0], [1], [0, 0, 1, 1], [], []>} : vector<16x256xbf16>, vector<256x256xbf16>, vector<16x256xf32> -> vector<16x256xf32>
    %111 = arith.addf %104, %110 : vector<16x256xf32>
    %c0_89 = arith.constant 0 : index
    %c0_90 = arith.constant 0 : index
    %112 = vector.load %arg9[%c0_89, %c0_90] : memref<1x32xf32, #tpu.memory_space<vmem>>, vector<1x32xf32>
    %c0_91 = arith.constant 0 : index
    %c0_92 = arith.constant 0 : index
    %113 = vector.load %arg10[%c0_91, %c0_92] : memref<1x32xf32, #tpu.memory_space<vmem>>, vector<1x32xf32>
    %cst_93 = arith.constant dense<0.000000e+00> : vector<256xf32>
    %114 = vector.multi_reduction <add>, %111, %cst_93 [0] : vector<16x256xf32> to vector<256xf32>
    %115 = vector.shape_cast %114 : vector<256xf32> to vector<1x256xf32>
    %116 = arith.mulf %111, %111 : vector<16x256xf32>
    %cst_94 = arith.constant dense<0.000000e+00> : vector<256xf32>
    %117 = vector.multi_reduction <add>, %116, %cst_94 [0] : vector<16x256xf32> to vector<256xf32>
    %118 = vector.shape_cast %117 : vector<256xf32> to vector<1x256xf32>
    %cst_95 = arith.constant dense<0.000000e+00> : vector<1x32xf32>
    %119 = tpu.matmul %115, %0, %cst_95 {dimension_numbers = #tpu.dot_dimension_numbers<[1], [0], [0], [1], [0, 0, 1, 1], [], []>} : vector<1x256xf32>, vector<256x32xf32>, vector<1x32xf32> -> vector<1x32xf32>
    %cst_96 = arith.constant 1.280000e+02 : f32
    %120 = vector.broadcast %cst_96 : f32 to vector<1x32xf32>
    %121 = arith.divf %119, %120 : vector<1x32xf32>
    %cst_97 = arith.constant dense<0.000000e+00> : vector<1x32xf32>
    %122 = tpu.matmul %118, %0, %cst_97 {dimension_numbers = #tpu.dot_dimension_numbers<[1], [0], [0], [1], [0, 0, 1, 1], [], []>} : vector<1x256xf32>, vector<256x32xf32>, vector<1x32xf32> -> vector<1x32xf32>
    %cst_98 = arith.constant 1.280000e+02 : f32
    %123 = vector.broadcast %cst_98 : f32 to vector<1x32xf32>
    %124 = arith.divf %122, %123 : vector<1x32xf32>
    %125 = arith.mulf %121, %121 : vector<1x32xf32>
    %126 = arith.subf %124, %125 : vector<1x32xf32>
    %cst_99 = arith.constant 0.000000e+00 : f32
    %127 = vector.broadcast %cst_99 : f32 to vector<1x32xf32>
    %128 = arith.maximumf %126, %127 : vector<1x32xf32>
    %cst_100 = arith.constant 9.99999974E-6 : f32
    %129 = vector.broadcast %cst_100 : f32 to vector<1x32xf32>
    %130 = arith.addf %128, %129 : vector<1x32xf32>
    %131 = math.rsqrt %130 : vector<1x32xf32>
    %132 = arith.mulf %112, %131 : vector<1x32xf32>
    %133 = arith.mulf %121, %132 : vector<1x32xf32>
    %134 = arith.subf %113, %133 : vector<1x32xf32>
    %cst_101 = arith.constant dense<0.000000e+00> : vector<1x256xf32>
    %135 = tpu.matmul %132, %1, %cst_101 {dimension_numbers = #tpu.dot_dimension_numbers<[1], [0], [0], [1], [0, 0, 1, 1], [], []>} : vector<1x32xf32>, vector<32x256xf32>, vector<1x256xf32> -> vector<1x256xf32>
    %cst_102 = arith.constant dense<0.000000e+00> : vector<1x256xf32>
    %136 = tpu.matmul %134, %1, %cst_102 {dimension_numbers = #tpu.dot_dimension_numbers<[1], [0], [0], [1], [0, 0, 1, 1], [], []>} : vector<1x32xf32>, vector<32x256xf32>, vector<1x256xf32> -> vector<1x256xf32>
    %137 = vector.broadcast %135 : vector<1x256xf32> to vector<16x256xf32>
    %138 = arith.mulf %111, %137 : vector<16x256xf32>
    %139 = vector.broadcast %136 : vector<1x256xf32> to vector<16x256xf32>
    %140 = arith.addf %138, %139 : vector<16x256xf32>
    %c0_103 = arith.constant 0 : index
    %c0_104 = arith.constant 0 : index
    %141 = vector.load %arg0[%c0_103, %c0_104] : memref<16x256xf32, #tpu.memory_space<vmem>>, vector<16x256xf32>
    %142 = arith.addf %141, %140 : vector<16x256xf32>
    %cst_105 = arith.constant 0.000000e+00 : f32
    %143 = vector.broadcast %cst_105 : f32 to vector<16x256xf32>
    %144 = arith.maximumf %142, %143 : vector<16x256xf32>
    %c0_106 = arith.constant 0 : index
    %c0_107 = arith.constant 0 : index
    %145 = vector.load %arg13[%c0_106, %c0_107] : memref<16x256xf32, #tpu.memory_space<vmem>>, vector<16x256xf32>
    tpu.vector_store %arg13[%c0_106, %c0_107], %144 {strides = array<i32>} : memref<16x256xf32, #tpu.memory_space<vmem>>, vector<16x256xf32>,
    return
  }
}

</mosaic_0001>

<bundles_post_ra>
// kernel: tpu_custom_call.1
= control target key start
LH: loop header
LB: loop body
LE: loop exit
PB: predicated region body
PF: predicated region fallthrough
CT: control target
= control target key end

     0   :  { %18 = vsyncpa [#allocation4], 0  ;;  %s4458_s0 = inlined_call_operand.vmem [shape: f32[16,256], index: 0, kind: input, shape index: {}]   ;;  %s4459_s1 = inlined_call_operand.hbm [shape: bf16[3,256,256], index: 1, kind: input, shape index: {}]   ;;  %s4460_s2 = inlined_call_operand.vmem [shape: f32[1,32], index: 2, kind: input, shape index: {}]   ;;  %s4461_s3 = inlined_call_operand.vmem [shape: f32[1,32], index: 3, kind: input, shape index: {}]   ;;  %s4462_s4 = inlined_call_operand.vmem [shape: f32[32,2], index: 4, kind: input, shape index: {}]   ;;  %s4463_s5 = inlined_call_operand.vmem [shape: f32[1,2], index: 5, kind: input, shape index: {}]   ;;  %s4464_s6 = inlined_call_operand.vmem [shape: f32[2,32], index: 6, kind: input, shape index: {}]   ;;  %s4465_s7 = inlined_call_operand.vmem [shape: f32[1,32], index: 7, kind: input, shape index: {}]   ;;  %s4466_s8 = inlined_call_operand.hbm [shape: bf16[3,256,256], index: 8, kind: input, shape index: {}]   ;;  %s4467_s9 = inlined_call_operand.vmem [shape: f32[1,32], index: 9, kind: input, shape index: {}]   ;;  %s4468_s10 = inlined_call_operand.vmem [shape: f32[1,32], index: 10, kind: input, shape index: {}]   ;;  %s4469_s11 = inlined_call_operand.vmem [shape: f32[256,32], index: 11, kind: input, shape index: {}]   ;;  %s4470_s12 = inlined_call_operand.vmem [shape: f32[32,256], index: 12, kind: input, shape index: {}]   ;;  %s4471_s13 = inlined_call_operand.hbm [shape: f32[16,256], index: 13, kind: output, shape index: {}]  }
   0x1   :  { %19 = vsyncpa [#allocation7], 0 }
   0x2   :  { %20 = vsyncpa [#allocation5], 0  ;;  %s3903_s25 = smov [#allocation3]   ;;  %s3831_s29 = scalar_lea.hbm %s4459_s1, 12288 }
   0x3   :  { %s28_s26 = sshll.u32 %s3903_s25, 4  ;;  %p3832_p0 = scmp.ne.s32.totalorder %s4459_s1, %s3831_s29  ;;  %s29_s26 = int_to_ptr.vmem [resolvable:$true] %s28_s26 }
   0x4   :  { %p3835_p1 = scmp.lt.u32.totalorder %s3831_s29, %s4459_s1 }
   0x6   :  { %p3837_p2 = pnand %p3835_p1, %p3832_p0 }
   0x8   :  { %3840 = shalt.err (!%p3837_p2)
}
   0x9   :  { %s3841_s17 = scalar_lea.vmem %s29_s26, 12288  ;;  %p3846_p4 = scmp.lt.s32.totalorder %s29_s26, %s29_s26 }
   0xa   :  { %p3842_p3 = scmp.ne.s32.totalorder %s29_s26, %s3841_s17  ;;  %p3847_p5 = scmp.lt.s32.totalorder %s3841_s17, %s3841_s17 }
   0xc   :  { %p3848_p6 = por %p3847_p5, %p3846_p4 }
   0xe   :  { %p3849_p7 = pnand %p3848_p6, %p3842_p3 }
  0x10   :  { %3852 = shalt.err (!%p3849_p7)
}
  0x11   :  { %s3904_s18 = smov 128   ;;  %s3905_s19 = smov 8  }
  0x12   :  { %34 = dma.hbm_to_vmem [thread:$0]  %s4459_s1, 12288, %s29_s26, [#allocation4], %s3904_s18, %s3904_s18, %s3905_s19  }
  0x13   :  { %s3906_s22 = smov [#allocation6]   ;;  %s3853_s27 = scalar_lea.hbm %s4466_s8, 12288 }
  0x14   :  { %s52_s23 = sshll.u32 %s3906_s22, 4  ;;  %p3854_p8 = scmp.ne.s32.totalorder %s4466_s8, %s3853_s27  ;;  %s53_s23 = int_to_ptr.vmem [resolvable:$true] %s52_s23 }
  0x15   :  { %p3857_p9 = scmp.lt.u32.totalorder %s3853_s27, %s4466_s8 }
  0x17   :  { %p3859_p10 = pnand %p3857_p9, %p3854_p8 }
  0x19   :  { %3862 = shalt.err (!%p3859_p10)
}
  0x1a   :  { %s3863_s15 = scalar_lea.vmem %s53_s23, 12288  ;;  %p3868_p12 = scmp.lt.s32.totalorder %s53_s23, %s53_s23 }
  0x1b   :  { %p3864_p11 = scmp.ne.s32.totalorder %s53_s23, %s3863_s15  ;;  %p3869_p13 = scmp.lt.s32.totalorder %s3863_s15, %s3863_s15 }
  0x1d   :  { %p3870_p0 = por %p3869_p13, %p3868_p12 }
  0x1f   :  { %p3871_p1 = pnand %p3870_p0, %p3864_p11 }
  0x21   :  { %3874 = shalt.err (!%p3871_p1)
}
  0x22   :  { %58 = dma.hbm_to_vmem [thread:$0]  %s4466_s8, 12288, %s53_s23, [#allocation7], %s3904_s18, %s3904_s18, %s3905_s19  }
  0x23   :  { %3897 = dma.done.wait [#allocation4], 12288  }
  0x24   :  { %3898 = vsyncadd [#allocation4], 4294955008 }
  0x25   :  { %3899 = dma.done.wait [#allocation7], 12288  }
  0x26   :  { %3900 = vsyncadd [#allocation7], 4294955008  ;;  %v113_v0 = vlaneseq  ;;  %v3907_v1 = vmov 0.0   ;;  %v3535_v2 = vld [vmem:[#allocation3 + $0x104] ss:$8 sps:$4 sm:$0xff]   ;;  %v131_v16 = vld [vmem:[%s4458_s0 + $0x18] sm:$0xff] }
  0x27   :  { %v3537_v3 = vld [vmem:[#allocation3 + $0x100] ss:$8 sps:$4 sm:$0xff]   ;;  %418 = vmatprep.subr.bf16.mxu0 %v3535_v2  ;;  %v3538_v4 = vld [vmem:[#allocation3 + $0x114] ss:$8 sps:$4 sm:$0xff]   ;;  %v3540_v5 = vld [vmem:[#allocation3 + $0x110] ss:$8 sps:$4 sm:$0xff]  }
  0x28   :  { %vm115_vm0 = vcmp.lt.s32.totalorder %v113_v0, 256  ;;  %419 = vmatpush1.bf16.msra.mxu0 %v3537_v3  ;;  %v3541_v6 = vld [vmem:[#allocation3 + $0x124] ss:$8 sps:$4 sm:$0xff]   ;;  %v3543_v7 = vld [vmem:[#allocation3 + $0x120] ss:$8 sps:$4 sm:$0xff]   ;;  %v139_v18 = vrot.slane %v131_v16, 7 }
  0x29   :  { %117 = vst.msk [vmem:[#allocation2] ss:$8 sm:$0x3] %vm115_vm0, %v3907_v1  ;;  %120 = vst.msk [vmem:[#allocation2 + $0x20] ss:$8 sm:$0x3] %vm115_vm0, %v3907_v1  ;;  %420 = vmatprep.subr.bf16.mxu0 %v3538_v4 }
  0x2a   :  { %123 = vst.msk [vmem:[#allocation2 + $0x11] ss:$8 sm:$0x3] %vm115_vm0, %v3907_v1  ;;  %126 = vst.msk [vmem:[#allocation2 + $0x31] ss:$8 sm:$0x3] %vm115_vm0, %v3907_v1 }
  0x2b   :  { %v3544_v8 = vld [vmem:[#allocation3 + $0x134] ss:$8 sps:$4 sm:$0xff]   ;;  %v3546_v9 = vld [vmem:[#allocation3 + $0x130] ss:$8 sps:$4 sm:$0xff]   ;;  %v3547_v10 = vld [vmem:[#allocation3 + $0x144] ss:$8 sps:$4 sm:$0xff]  }
  0x2c   :  { %421 = vmatpush1.bf16.msra.mxu0 %v3540_v5  ;;  %v3549_v11 = vld [vmem:[#allocation3 + $0x140] ss:$8 sps:$4 sm:$0xff]   ;;  %v3550_v12 = vld [vmem:[#allocation3 + $0x154] ss:$8 sps:$4 sm:$0xff]   ;;  %v3552_v13 = vld [vmem:[#allocation3 + $0x150] ss:$8 sps:$4 sm:$0xff]  }
  0x2d   :  { %422 = vmatprep.subr.bf16.mxu0 %v3541_v6  ;;  %v3553_v14 = vld [vmem:[#allocation3 + $0x164] ss:$8 sps:$4 sm:$0xff]   ;;  %v3555_v19 = vld [vmem:[#allocation3 + $0x160] ss:$8 sps:$4 sm:$0xff]   ;;  %v130_v21 = vld [vmem:[%s4458_s0 + $0x10] sm:$0xff]  ;;  %vm206_vm1 = vcmask 1046528  }
  0x2e   :  { %v129_v15 = vld [vmem:[%s4458_s0 + $0x8] sm:$0xff]  ;;  %v128_v20 = vld [vmem:[%s4458_s0] sm:$0xff]  ;;  %v3556_v22 = vld [vmem:[#allocation3 + $0x174] ss:$8 sps:$4 sm:$0xff]   ;;  %149 = vst [vmem:[#allocation2 + $0x28] sm:$0xfe] %v139_v18 }
  0x2f   :  { %v137_v17 = vrot.slane %v129_v15, 7  ;;  %151 = vst [vmem:[#allocation2 + $0x38] sm:$0x1] %v139_v18  ;;  %v136_v23 = vrot.slane %v128_v20, 7  ;;  %v138_v24 = vrot.slane %v130_v21, 7  ;;  %v73_v15 = vld [vmem:[%s4469_s11] sm:$0xff] }
  0x30   :  { %423 = vmatpush1.bf16.msra.mxu0 %v3543_v7  ;;  %v3558_v25 = vld [vmem:[#allocation3 + $0x170] ss:$8 sps:$4 sm:$0xff]   ;;  %v3559_v26 = vld [vmem:[#allocation3 + $0x184] ss:$8 sps:$4 sm:$0xff]   ;;  %v3561_v27 = vld [vmem:[#allocation3 + $0x180] ss:$8 sps:$4 sm:$0xff]  }
  0x31   :  { %424 = vmatprep.subr.bf16.mxu0 %v3544_v8  ;;  %145 = vst [vmem:[#allocation2 + $0x8] sm:$0xfe] %v137_v17  ;;  %147 = vst [vmem:[#allocation2 + $0x18] sm:$0x1] %v137_v17  ;;  %v3562_v28 = vld [vmem:[#allocation3 + $0x194] ss:$8 sps:$4 sm:$0xff]  }
  0x32   :  { %144 = vst [vmem:[#allocation2] sm:$0xfe] %v136_v23  ;;  %146 = vst [vmem:[#allocation2 + $0x10] sm:$0x1] %v136_v23  ;;  %v3564_v38 = vld [vmem:[#allocation3 + $0x190] ss:$8 sps:$4 sm:$0xff]  }
  0x33   :  { %148 = vst [vmem:[#allocation2 + $0x20] sm:$0xfe] %v138_v24  ;;  %150 = vst [vmem:[#allocation2 + $0x30] sm:$0x1] %v138_v24  ;;  %v3565_v40 = vld [vmem:[#allocation3 + $0x1a4] ss:$8 sps:$4 sm:$0xff]  }
  0x34   :  { %425 = vmatpush1.bf16.msra.mxu0 %v3546_v9  ;;  %v3567_v42 = vld [vmem:[#allocation3 + $0x1a0] ss:$8 sps:$4 sm:$0xff]   ;;  %v3568_v43 = vld [vmem:[#allocation3 + $0x1b4] ss:$8 sps:$4 sm:$0xff]   ;;  %v3570_v44 = vld [vmem:[#allocation3 + $0x1b0] ss:$8 sps:$4 sm:$0xff]  }
  0x35   :  { %426 = vmatprep.subr.bf16.mxu0 %v3547_v10  ;;  %v195_v31 = vld [vmem:[#allocation2 + $0x28] sm:$0xfe]  ;;  %v3574_v47 = vld [vmem:[#allocation3 + $0x1d4] ss:$8 sps:$4 sm:$0xff]   ;;  %v3576_v48 = vld [vmem:[#allocation3 + $0x1d0] ss:$8 sps:$4 sm:$0xff]  }
  0x36   :  { %v197_v32 = vld [vmem:[#allocation2 + $0x38] sm:$0x1]  ;;  %v216_v35 = vrot.slane %v195_v31, 1  ;;  %v3571_v45 = vld [vmem:[#allocation3 + $0x1c4] ss:$8 sps:$4 sm:$0xff]   ;;  %v91_v18 = vld [vmem:[%s4469_s11 + $0x90] sm:$0xff] }
  0x37   :  { %v217_v36 = vrot.slane %v197_v32, 1  ;;  %v3573_v46 = vld [vmem:[#allocation3 + $0x1c0] ss:$8 sps:$4 sm:$0xff]   ;;  %v3577_v49 = vld [vmem:[#allocation3 + $0x1e4] ss:$8 sps:$4 sm:$0xff]   ;;  %v75_v24 = vld [vmem:[%s4469_s11 + $0x10] sm:$0xff] }
  0x38   :  { %427 = vmatpush1.bf16.msra.mxu0 %v3549_v11  ;;  %v191_v29 = vld [vmem:[#allocation2 + $0x8] sm:$0xfe]  ;;  %v193_v30 = vld [vmem:[#allocation2 + $0x18] sm:$0x1]  ;;  %v3580_v59 = vld [vmem:[#allocation3 + $0x1f4] ss:$8 sps:$4 sm:$0xff]  }
  0x39   :  { %428 = vmatprep.subr.bf16.mxu0 %v3550_v12  ;;  %v210_v33 = vrot.slane %v191_v29, 1  ;;  %v211_v34 = vrot.slane %v193_v30, 1  ;;  %v218_v39 = vsel %vm206_vm1, %v216_v35, %v217_v36  ;;  %v190_v50 = vld [vmem:[#allocation2] sm:$0xfe]  ;;  %v192_v51 = vld [vmem:[#allocation2 + $0x10] sm:$0x1] }
  0x3a   :  { %v194_v52 = vld [vmem:[#allocation2 + $0x20] sm:$0xfe]  ;;  %v196_v53 = vld [vmem:[#allocation2 + $0x30] sm:$0x1]  ;;  %v207_v55 = vrot.slane %v190_v50, 1  ;;  %v208_v56 = vrot.slane %v192_v51, 1 }
  0x3b   :  { %v212_v37 = vsel %vm206_vm1, %v210_v33, %v211_v34  ;;  %v3579_v54 = vld [vmem:[#allocation3 + $0x1e0] ss:$8 sps:$4 sm:$0xff]   ;;  %v213_v57 = vrot.slane %v194_v52, 1  ;;  %v214_v58 = vrot.slane %v196_v53, 1  ;;  %v3582_v60 = vld [vmem:[#allocation3 + $0x1f0] ss:$8 sps:$4 sm:$0xff]  }
  0x3c   :  { %429 = vmatpush1.bf16.msra.mxu0 %v3552_v13  ;;  %v224_v41 = vpack.c.bf16 %v218_v39, %v212_v37  ;;  %v3585_v61 = vld [vmem:[#allocation3 + $0x4] ss:$8 sps:$4 sm:$0xff]   ;;  %v209_v62 = vsel %vm206_vm1, %v207_v55, %v208_v56  ;;  %v3583_v5 = vld [vmem:[#allocation3] ss:$8 sps:$4 sm:$0xff]   ;;  %v3588_v7 = vld [vmem:[#allocation3 + $0x14] ss:$8 sps:$4 sm:$0xff]  }
  0x3d   :  { %430 = vmatprep.subr.bf16.mxu0 %v3553_v14  ;;  %v215_v63 = vsel %vm206_vm1, %v213_v57, %v214_v58  ;;  %v153_v2 = vld [vmem:[#allocation2 + $0x8] sm:$0xff]  ;;  %v3586_v8 = vld [vmem:[#allocation3 + $0x10] ss:$8 sps:$4 sm:$0xff]   ;;  %v3594_v11 = vld [vmem:[#allocation3 + $0x34] ss:$8 sps:$4 sm:$0xff]   ;;  %vm680_vm2 = vcmask 1045504  }
  0x3e   :  { %450 = vmatprep.mubr.bf16.mxu0 %v224_v41  ;;  %v155_v3 = vld [vmem:[#allocation2 + $0x28] sm:$0xff]  ;;  %v223_v4 = vpack.c.bf16 %v215_v63, %v209_v62  ;;  %v3592_v12 = vld [vmem:[#allocation3 + $0x30] ss:$8 sps:$4 sm:$0xff]   ;;  %v89_v13 = vld [vmem:[%s4469_s11 + $0x80] sm:$0xff]  ;;  %vm1124_vm3 = vcmask 261120   ;;  %vm1329_vm4 = vcmask 1041409  }
  0x3f   :  { %v157_v6 = vpack.c.bf16 %v155_v3, %v153_v2  ;;  %v3591_v9 = vld [vmem:[#allocation3 + $0x24] ss:$8 sps:$4 sm:$0xff]   ;;  %v3589_v10 = vld [vmem:[#allocation3 + $0x20] ss:$8 sps:$4 sm:$0xff]   ;;  %v95_v32 = vld [vmem:[%s4469_s11 + $0xb0] sm:$0xff]  ;;  %vm3909_vm5 = vmmov 0  }
  0x40   :  { %431 = vmatpush1.bf16.msra.mxu0 %v3555_v19  ;;  %v90_v14 = vld [vmem:[%s4469_s11 + $0x88] sm:$0xff]  ;;  %v92_v19 = vld [vmem:[%s4469_s11 + $0x98] sm:$0xff]  ;;  %v77_v29 = vld [vmem:[%s4469_s11 + $0x20] sm:$0xff]  ;;  %vm1503_vm6 = vcmask 1041408   ;;  %vm1499_vm7 = vcmask 15360   ;;  %s3911_s27 = smov [#allocation8]  }
  0x41   :  { %432 = vmatprep.subr.bf16.mxu0 %v3556_v22  ;;  %v4038_v16 = vpack.c.bf16 %v90_v14, %v89_v13  ;;  %v74_v17 = vld [vmem:[%s4469_s11 + $0x8] sm:$0xff]  ;;  %v4052_v23 = vpack.c.bf16 %v92_v19, %v91_v18  ;;  %v96_v33 = vld [vmem:[%s4469_s11 + $0xb8] sm:$0xff]  ;;  %s2888_s28 = sshll.u32 %s3911_s27, 4  ;;  %s2889_s28 = int_to_ptr.vmem [resolvable:$true] %s2888_s28 }
  0x42   :  { %v3597_v20 = vld [vmem:[#allocation3 + $0x44] ss:$8 sps:$4 sm:$0xff]   ;;  %v4049_v21 = vpack.c.bf16 %v74_v17, %v73_v15  ;;  %v3595_v22 = vld [vmem:[#allocation3 + $0x40] ss:$8 sps:$4 sm:$0xff]   ;;  %v3598_v34 = vld [vmem:[#allocation3 + $0x50] ss:$8 sps:$4 sm:$0xff]   ;;  %v4088_v39 = vpack.c.bf16 %v96_v33, %v95_v32  ;;  %p3880_p3 = scmp.lt.s32.totalorder %s2889_s28, %s2889_s28 }
  0x43   :  { %3335 = vmatprep.subr.bf16.mxu1 %v4038_v16  ;;  %v78_v30 = vld [vmem:[%s4469_s11 + $0x28] sm:$0xff]  ;;  %v3604_v41 = vld [vmem:[#allocation3 + $0x70] ss:$8 sps:$4 sm:$0xff]   ;;  %v3624_v52 = vld [vmem:[#allocation3 + $0xd4] ss:$8 sps:$4 sm:$0xff]   ;;  %s3875_s29 = scalar_lea.vmem %s2889_s28, 512 }
  0x44   :  { %433 = vmatpush1.bf16.msra.mxu0 %v3558_v25  ;;  %v76_v25 = vld [vmem:[%s4469_s11 + $0x18] sm:$0xff]  ;;  %3337 = vmatpush3.bf16.msra.mxu1 %v4049_v21  ;;  %v3603_v36 = vld [vmem:[#allocation3 + $0x64] ss:$8 sps:$4 sm:$0xff]   ;;  %v4086_v37 = vpack.c.bf16 %v78_v30, %v77_v29  ;;  %v3619_v51 = vld [vmem:[#allocation3 + $0xc0] ss:$8 sps:$4 sm:$0xff]   ;;  %p3876_p2 = scmp.ne.s32.totalorder %s2889_s28, %s3875_s29  ;;  %p3881_p4 = scmp.lt.s32.totalorder %s3875_s29, %s3875_s29 }
  0x45   :  { %434 = vmatprep.subr.bf16.mxu0 %v3559_v26  ;;  %v3600_v26 = vld [vmem:[#allocation3 + $0x54] ss:$8 sps:$4 sm:$0xff]   ;;  %3339 = vmatprep.subr.bf16.mxu1 %v4052_v23  ;;  %v4074_v31 = vpack.c.bf16 %v76_v25, %v75_v24  ;;  %v3621_v50 = vld [vmem:[#allocation3 + $0xc4] ss:$8 sps:$4 sm:$0xff]   ;;  %v3622_v53 = vld [vmem:[#allocation3 + $0xd0] ss:$8 sps:$4 sm:$0xff]  }
  0x46   :  { %v665_v55 = vld [vmem:[#allocation2 + $0x8] sm:$0xfc]  ;;  %v667_v56 = vld [vmem:[#allocation2 + $0x18] sm:$0x3]  ;;  %v3642_v17 = vld [vmem:[#allocation3 + $0x234] ss:$8 sps:$4 sm:$0xff]   ;;  %p3882_p5 = por %p3881_p4, %p3880_p3 }
  0x47   :  { %v669_v57 = vld [vmem:[#allocation2 + $0x28] sm:$0xfc]  ;;  %v671_v58 = vld [vmem:[#allocation2 + $0x38] sm:$0x3]  ;;  %v685_v62 = vrot.slane %v667_v56, 2 }
  0x48   :  { %435 = vmatpush1.bf16.msra.mxu0 %v3561_v27  ;;  %v93_v27 = vld [vmem:[%s4469_s11 + $0xa0] sm:$0xff]  ;;  %3341 = vmatpush3.bf16.msra.mxu1 %v4074_v31  ;;  %v690_v63 = vrot.slane %v669_v57, 2  ;;  %v691_v2 = vrot.slane %v671_v58, 2  ;;  %v3628_v3 = vld [vmem:[#allocation3 + $0xf0] ss:$8 sps:$4 sm:$0xff]   ;;  %p3883_p6 = pnand %p3882_p5, %p3876_p2 }
  0x49   :  { %436 = vmatprep.subr.bf16.mxu0 %v3562_v28  ;;  %v94_v28 = vld [vmem:[%s4469_s11 + $0xa8] sm:$0xff]  ;;  %v3634_v13 = vld [vmem:[#allocation3 + $0x210] ss:$8 sps:$4 sm:$0xff]   ;;  %v3660_v32 = vld [vmem:[#allocation3 + $0x294] ss:$8 sps:$4 sm:$0xff]  }
  0x4a   :  { %v4082_v35 = vpack.c.bf16 %v94_v28, %v93_v27  ;;  %v3639_v14 = vld [vmem:[#allocation3 + $0x224] ss:$8 sps:$4 sm:$0xff]   ;;  %v3637_v15 = vld [vmem:[#allocation3 + $0x220] ss:$8 sps:$4 sm:$0xff]   ;;  %v3640_v18 = vld [vmem:[#allocation3 + $0x230] ss:$8 sps:$4 sm:$0xff]  }
  0x4b   :  { %v3645_v19 = vld [vmem:[#allocation3 + $0x244] ss:$8 sps:$4 sm:$0xff]   ;;  %v3646_v24 = vld [vmem:[#allocation3 + $0x250] ss:$8 sps:$4 sm:$0xff]   ;;  %v3654_v27 = vld [vmem:[#allocation3 + $0x274] ss:$8 sps:$4 sm:$0xff]  }
  0x4c   :  { %437 = vmatpush1.bf16.msra.mxu0 %v3564_v38  ;;  %3343 = vmatprep.subr.bf16.mxu1 %v4082_v35  ;;  %v3601_v38 = vld [vmem:[#allocation3 + $0x60] ss:$8 sps:$4 sm:$0xff]   ;;  %v3651_v25 = vld [vmem:[#allocation3 + $0x264] ss:$8 sps:$4 sm:$0xff]   ;;  %v3652_v28 = vld [vmem:[#allocation3 + $0x270] ss:$8 sps:$4 sm:$0xff]  }
  0x4d   :  { %438 = vmatprep.subr.bf16.mxu0 %v3565_v40  ;;  %v3606_v40 = vld [vmem:[#allocation3 + $0x74] ss:$8 sps:$4 sm:$0xff]   ;;  %3345 = vmatpush3.bf16.msra.mxu1 %v4086_v37  ;;  %v3657_v29 = vld [vmem:[#allocation3 + $0x284] ss:$8 sps:$4 sm:$0xff]   ;;  %v3655_v30 = vld [vmem:[#allocation3 + $0x280] ss:$8 sps:$4 sm:$0xff]  }
  0x4e   :  { %3347 = vmatprep.subr.bf16.mxu1 %v4088_v39  ;;  %v3658_v33 = vld [vmem:[#allocation3 + $0x290] ss:$8 sps:$4 sm:$0xff]  }
  0x4f   :  { %v3676_v56 = vld [vmem:[#allocation3 + $0x2f0] ss:$8 sps:$4 sm:$0xff]  }
  0x50   :  { %439 = vmatpush1.bf16.msra.mxu0 %v3567_v42  ;;  %v3609_v42 = vld [vmem:[#allocation3 + $0x84] ss:$8 sps:$4 sm:$0xff]  }
  0x51   :  { %440 = vmatprep.subr.bf16.mxu0 %v3568_v43  ;;  %v3607_v43 = vld [vmem:[#allocation3 + $0x80] ss:$8 sps:$4 sm:$0xff]  }
  0x54   :  { %441 = vmatpush1.bf16.msra.mxu0 %v3570_v44  ;;  %v3612_v44 = vld [vmem:[#allocation3 + $0x94] ss:$8 sps:$4 sm:$0xff]  }
  0x55   :  { %442 = vmatprep.subr.bf16.mxu0 %v3571_v45  ;;  %v3610_v45 = vld [vmem:[#allocation3 + $0x90] ss:$8 sps:$4 sm:$0xff]  }
  0x58   :  { %443 = vmatpush1.bf16.msra.mxu0 %v3573_v46  ;;  %v3615_v46 = vld [vmem:[#allocation3 + $0xa4] ss:$8 sps:$4 sm:$0xff]  }
  0x59   :  { %444 = vmatprep.subr.bf16.mxu0 %v3574_v47  ;;  %v3613_v47 = vld [vmem:[#allocation3 + $0xa0] ss:$8 sps:$4 sm:$0xff]  }
  0x5c   :  { %445 = vmatpush1.bf16.msra.mxu0 %v3576_v48  ;;  %v3618_v48 = vld [vmem:[#allocation3 + $0xb4] ss:$8 sps:$4 sm:$0xff]  }
  0x5d   :  { %446 = vmatprep.subr.bf16.mxu0 %v3577_v49  ;;  %v3616_v49 = vld [vmem:[#allocation3 + $0xb0] ss:$8 sps:$4 sm:$0xff]  }
  0x60   :  { %447 = vmatpush1.bf16.msra.mxu0 %v3579_v54  ;;  %v3627_v54 = vld [vmem:[#allocation3 + $0xe4] ss:$8 sps:$4 sm:$0xff]  }
  0x61   :  { %448 = vmatprep.subr.bf16.mxu0 %v3580_v59  ;;  %v3625_v59 = vld [vmem:[#allocation3 + $0xe0] ss:$8 sps:$4 sm:$0xff]  }
  0x64   :  { %449 = vmatpush1.bf16.msra.mxu0 %v3582_v60  ;;  %v3630_v60 = vld [vmem:[#allocation3 + $0xf4] ss:$8 sps:$4 sm:$0xff]  }
  0x65   :  { %621 = vmatprep.subr.bf16.mxu0 %v3585_v61  ;;  %v684_v61 = vrot.slane %v665_v55, 2  ;;  %v3678_v55 = vld [vmem:[#allocation3 + $0x2f4] ss:$8 sps:$4 sm:$0xff]  }
  0x67   :  { %451 = vmatmul.mubr.bf16.vlgmr.msra.gmra.mrb[0].mxu0 %v223_v4  ;;  %v152_v4 = vld [vmem:[#allocation2] sm:$0xff] }
  0x68   :  { %622 = vmatpush1.bf16.msra.mxu0 %v3583_v5  ;;  %653 = vmatprep.mubr.bf16.mxu0 %v157_v6  ;;  %v154_v5 = vld [vmem:[#allocation2 + $0x20] sm:$0xff] }
  0x69   :  { %623 = vmatprep.subr.bf16.mxu0 %v3588_v7  ;;  %v3633_v6 = vld [vmem:[#allocation3 + $0x204] ss:$8 sps:$4 sm:$0xff]   ;;  %v686_v7 = vsel %vm680_vm2, %v684_v61, %v685_v62  ;;  %v80_v61 = vld [vmem:[%s4469_s11 + $0x38] sm:$0xff] }
  0x6c   :  { %624 = vmatpush1.bf16.msra.mxu0 %v3586_v8  ;;  %v692_v8 = vsel %vm680_vm2, %v690_v63, %v691_v2  ;;  %v97_v63 = vld [vmem:[%s4469_s11 + $0xc0] sm:$0xff]  ;;  %v98_v2 = vld [vmem:[%s4469_s11 + $0xc8] sm:$0xff] }
  0x6d   :  { %625 = vmatprep.subr.bf16.mxu0 %v3591_v9  ;;  %v156_v9 = vpack.c.bf16 %v154_v5, %v152_v4  ;;  %v81_v4 = vld [vmem:[%s4469_s11 + $0x40] sm:$0xff]  ;;  %v82_v5 = vld [vmem:[%s4469_s11 + $0x48] sm:$0xff] }
  0x70   :  { %626 = vmatpush1.bf16.msra.mxu0 %v3589_v10  ;;  %v3631_v10 = vld [vmem:[#allocation3 + $0x200] ss:$8 sps:$4 sm:$0xff]  }
  0x71   :  { %627 = vmatprep.subr.bf16.mxu0 %v3594_v11  ;;  %v698_v11 = vpack.c.bf16 %v692_v8, %v686_v7  ;;  %v99_v7 = vld [vmem:[%s4469_s11 + $0xd0] sm:$0xff]  ;;  %v100_v8 = vld [vmem:[%s4469_s11 + $0xd8] sm:$0xff] }
  0x74   :  { %628 = vmatpush1.bf16.msra.mxu0 %v3592_v12  ;;  %v3636_v12 = vld [vmem:[#allocation3 + $0x214] ss:$8 sps:$4 sm:$0xff]  }
  0x75   :  { %629 = vmatprep.subr.bf16.mxu0 %v3597_v20  ;;  %v3643_v20 = vld [vmem:[#allocation3 + $0x240] ss:$8 sps:$4 sm:$0xff]  }
  0x78   :  { %630 = vmatpush1.bf16.msra.mxu0 %v3595_v22  ;;  %v3648_v22 = vld [vmem:[#allocation3 + $0x254] ss:$8 sps:$4 sm:$0xff]  }
  0x79   :  { %631 = vmatprep.subr.bf16.mxu0 %v3600_v26  ;;  %v3649_v26 = vld [vmem:[#allocation3 + $0x260] ss:$8 sps:$4 sm:$0xff]  }
  0x7c   :  { %632 = vmatpush1.bf16.msra.mxu0 %v3598_v34  ;;  %v3663_v34 = vld [vmem:[#allocation3 + $0x2a4] ss:$8 sps:$4 sm:$0xff]  }
  0x7d   :  { %633 = vmatprep.subr.bf16.mxu0 %v3603_v36  ;;  %v3661_v36 = vld [vmem:[#allocation3 + $0x2a0] ss:$8 sps:$4 sm:$0xff]  }
  0x80   :  { %634 = vmatpush1.bf16.msra.mxu0 %v3601_v38  ;;  %v3666_v38 = vld [vmem:[#allocation3 + $0x2b4] ss:$8 sps:$4 sm:$0xff]  }
  0x81   :  { %635 = vmatprep.subr.bf16.mxu0 %v3606_v40  ;;  %v3664_v40 = vld [vmem:[#allocation3 + $0x2b0] ss:$8 sps:$4 sm:$0xff]  }
  0x84   :  { %636 = vmatpush1.bf16.msra.mxu0 %v3604_v41  ;;  %v3669_v41 = vld [vmem:[#allocation3 + $0x2c4] ss:$8 sps:$4 sm:$0xff]  }
  0x85   :  { %637 = vmatprep.subr.bf16.mxu0 %v3609_v42  ;;  %v3667_v42 = vld [vmem:[#allocation3 + $0x2c0] ss:$8 sps:$4 sm:$0xff]  }
  0x88   :  { %638 = vmatpush1.bf16.msra.mxu0 %v3607_v43  ;;  %v3672_v43 = vld [vmem:[#allocation3 + $0x2d4] ss:$8 sps:$4 sm:$0xff]  }
  0x89   :  { %639 = vmatprep.subr.bf16.mxu0 %v3612_v44  ;;  %v3670_v44 = vld [vmem:[#allocation3 + $0x2d0] ss:$8 sps:$4 sm:$0xff]  }
  0x8c   :  { %640 = vmatpush1.bf16.msra.mxu0 %v3610_v45  ;;  %v3675_v45 = vld [vmem:[#allocation3 + $0x2e4] ss:$8 sps:$4 sm:$0xff]  }
  0x8d   :  { %641 = vmatprep.subr.bf16.mxu0 %v3615_v46  ;;  %v664_v46 = vld [vmem:[#allocation2] sm:$0xfc] }
  0x90   :  { %642 = vmatpush1.bf16.msra.mxu0 %v3613_v47  ;;  %v666_v47 = vld [vmem:[#allocation2 + $0x10] sm:$0x3] }
  0x91   :  { %643 = vmatprep.subr.bf16.mxu0 %v3618_v48  ;;  %v668_v48 = vld [vmem:[#allocation2 + $0x20] sm:$0xfc] }
  0x94   :  { %644 = vmatpush1.bf16.msra.mxu0 %v3616_v49  ;;  %v670_v49 = vld [vmem:[#allocation2 + $0x30] sm:$0x3] }
  0x95   :  { %645 = vmatprep.subr.bf16.mxu0 %v3621_v50  ;;  %v3673_v50 = vld [vmem:[#allocation3 + $0x2e0] ss:$8 sps:$4 sm:$0xff]  }
  0x98   :  { %646 = vmatpush1.bf16.msra.mxu0 %v3619_v51  ;;  %v681_v51 = vrot.slane %v664_v46, 2 }
  0x99   :  { %647 = vmatprep.subr.bf16.mxu0 %v3624_v52  ;;  %v682_v52 = vrot.slane %v666_v47, 2 }
  0x9b   :  { %v683_v57 = vsel %vm680_vm2, %v681_v51, %v682_v52 }
  0x9c   :  { %648 = vmatpush1.bf16.msra.mxu0 %v3622_v53  ;;  %v687_v53 = vrot.slane %v668_v48, 2 }
  0x9d   :  { %649 = vmatprep.subr.bf16.mxu0 %v3627_v54  ;;  %v688_v54 = vrot.slane %v670_v49, 2 }
  0x9f   :  { %v689_v58 = vsel %vm680_vm2, %v687_v53, %v688_v54 }
  0xa0   :  { %650 = vmatpush1.bf16.msra.mxu0 %v3625_v59  ;;  %v697_v59 = vpack.c.bf16 %v689_v58, %v683_v57 }
  0xa1   :  { %651 = vmatprep.subr.bf16.mxu0 %v3630_v60  ;;  %v79_v60 = vld [vmem:[%s4469_s11 + $0x30] sm:$0xff] }
  0xa2   :  { %v4109_v62 = vpack.c.bf16 %v80_v61, %v79_v60 }
  0xa4   :  { %652 = vmatpush1.bf16.msra.mxu0 %v3628_v3  ;;  %3349 = vmatpush3.bf16.msra.mxu1 %v4109_v62  ;;  %v4119_v3 = vpack.c.bf16 %v98_v2, %v97_v63 }
  0xa5   :  { %892 = vmatprep.subr.bf16.mxu0 %v3633_v6  ;;  %v4127_v6 = vpack.c.bf16 %v82_v5, %v81_v4 }
  0xa6   :  { %3351 = vmatprep.subr.bf16.mxu1 %v4119_v3 }
  0xa7   :  { %654 = vmatmul.mubr.bf16.vlgmr.msra.gmra.mrb[0].mxu0 %v156_v9  ;;  %v4139_v9 = vpack.c.bf16 %v100_v8, %v99_v7 }
  0xa8   :  { %893 = vmatpush1.bf16.msra.mxu0 %v3631_v10  ;;  %924 = vmatprep.mubr.bf16.mxu0 %v698_v11  ;;  %v83_v10 = vld [vmem:[%s4469_s11 + $0x50] sm:$0xff]  ;;  %v84_v11 = vld [vmem:[%s4469_s11 + $0x58] sm:$0xff] }
  0xa9   :  { %894 = vmatprep.subr.bf16.mxu0 %v3636_v12  ;;  %3353 = vmatpush3.bf16.msra.mxu1 %v4127_v6  ;;  %v4147_v12 = vpack.c.bf16 %v84_v11, %v83_v10  ;;  %v106_v10 = vld [vmem:[%s4470_s12 + $0x8] sm:$0xff]  ;;  %v108_v11 = vld [vmem:[%s4470_s12 + $0x18] sm:$0xff] }
  0xaa   :  { %3355 = vmatprep.subr.bf16.mxu1 %v4139_v9 }
  0xac   :  { %895 = vmatpush1.bf16.msra.mxu0 %v3634_v13  ;;  %v101_v13 = vld [vmem:[%s4469_s11 + $0xe0] sm:$0xff] }
  0xad   :  { %896 = vmatprep.subr.bf16.mxu0 %v3639_v14  ;;  %3357 = vmatpush3.bf16.msra.mxu1 %v4147_v12  ;;  %v102_v14 = vld [vmem:[%s4469_s11 + $0xe8] sm:$0xff] }
  0xb0   :  { %897 = vmatpush1.bf16.msra.mxu0 %v3637_v15  ;;  %v4159_v15 = vpack.c.bf16 %v102_v14, %v101_v13  ;;  %v105_v13 = vld [vmem:[%s4470_s12] sm:$0xff]  ;;  %v4240_v14 = vpack.c.bf16 %v108_v11, %v106_v10 }
  0xb1   :  { %898 = vmatprep.subr.bf16.mxu0 %v3642_v17  ;;  %v85_v17 = vld [vmem:[%s4469_s11 + $0x60] sm:$0xff] }
  0xb2   :  { %3359 = vmatprep.subr.bf16.mxu1 %v4159_v15 }
  0xb4   :  { %899 = vmatpush1.bf16.msra.mxu0 %v3640_v18  ;;  %v86_v18 = vld [vmem:[%s4469_s11 + $0x68] sm:$0xff] }
  0xb5   :  { %900 = vmatprep.subr.bf16.mxu0 %v3645_v19  ;;  %v4167_v19 = vpack.c.bf16 %v86_v18, %v85_v17  ;;  %v107_v17 = vld [vmem:[%s4470_s12 + $0x10] sm:$0xff]  ;;  %v110_v18 = vld [vmem:[%s4470_s12 + $0x28] sm:$0xff] }
  0xb7   :  { %3361 = vmatpush3.bf16.msra.mxu1 %v4167_v19 }
  0xb8   :  { %901 = vmatpush1.bf16.msra.mxu0 %v3643_v20  ;;  %v103_v20 = vld [vmem:[%s4469_s11 + $0xf0] sm:$0xff] }
  0xb9   :  { %902 = vmatprep.subr.bf16.mxu0 %v3648_v22  ;;  %v104_v22 = vld [vmem:[%s4469_s11 + $0xf8] sm:$0xff] }
  0xbc   :  { %903 = vmatpush1.bf16.msra.mxu0 %v3646_v24  ;;  %v87_v24 = vld [vmem:[%s4469_s11 + $0x70] sm:$0xff] }
  0xbd   :  { %904 = vmatprep.subr.bf16.mxu0 %v3651_v25  ;;  %v4182_v25 = vpack.c.bf16 %v104_v22, %v103_v20  ;;  %v112_v20 = vld [vmem:[%s4470_s12 + $0x38] sm:$0xff]  ;;  %v4251_v22 = vpack.c.bf16 %v107_v17, %v105_v13 }
  0xbf   :  { %3363 = vmatprep.subr.bf16.mxu1 %v4182_v25 }
  0xc0   :  { %905 = vmatpush1.bf16.msra.mxu0 %v3649_v26  ;;  %v88_v26 = vld [vmem:[%s4469_s11 + $0x78] sm:$0xff] }
  0xc1   :  { %906 = vmatprep.subr.bf16.mxu0 %v3654_v27  ;;  %v4187_v27 = vpack.c.bf16 %v88_v26, %v87_v24  ;;  %v4253_v24 = vpack.c.bf16 %v112_v20, %v110_v18  ;;  %v109_v26 = vld [vmem:[%s4470_s12 + $0x20] sm:$0xff] }
  0xc3   :  { %3365 = vmatpush3.bf16.msra.mxu1 %v4187_v27 }
  0xc4   :  { %907 = vmatpush1.bf16.msra.mxu0 %v3652_v28  ;;  %3367 = vmatprep.subr.bf16.mxu1 %v4240_v14 }
  0xc5   :  { %908 = vmatprep.subr.bf16.mxu0 %v3657_v29 }
  0xc8   :  { %909 = vmatpush1.bf16.msra.mxu0 %v3655_v30 }
  0xc9   :  { %910 = vmatprep.subr.bf16.mxu0 %v3660_v32 }
  0xcc   :  { %911 = vmatpush1.bf16.msra.mxu0 %v3658_v33 }
  0xcd   :  { %912 = vmatprep.subr.bf16.mxu0 %v3663_v34 }
  0xd0   :  { %913 = vmatpush1.bf16.msra.mxu0 %v3661_v36 }
  0xd1   :  { %914 = vmatprep.subr.bf16.mxu0 %v3666_v38 }
  0xd4   :  { %915 = vmatpush1.bf16.msra.mxu0 %v3664_v40 }
  0xd5   :  { %916 = vmatprep.subr.bf16.mxu0 %v3669_v41 }
  0xd8   :  { %917 = vmatpush1.bf16.msra.mxu0 %v3667_v42 }
  0xd9   :  { %918 = vmatprep.subr.bf16.mxu0 %v3672_v43 }
  0xdc   :  { %919 = vmatpush1.bf16.msra.mxu0 %v3670_v44 }
  0xdd   :  { %920 = vmatprep.subr.bf16.mxu0 %v3675_v45 }
  0xe0   :  { %921 = vmatpush1.bf16.msra.mxu0 %v3673_v50 }
  0xe1   :  { %922 = vmatprep.subr.bf16.mxu0 %v3678_v55 }
  0xe4   :  { %923 = vmatpush1.bf16.msra.mxu0 %v3676_v56 }
  0xe5   :  { %3303 = vmatprep.subr.bf16.mxu0 %v4038_v16 }
  0xe7   :  { %925 = vmatmul.mubr.bf16.vlgmr.msra.gmra.mrb[0].mxu0 %v697_v59 }
  0xe8   :  { %3305 = vmatpush3.bf16.msra.mxu0 %v4049_v21 }
  0xe9   :  { %3307 = vmatprep.subr.bf16.mxu0 %v4052_v23 }
  0xec   :  { %3309 = vmatpush3.bf16.msra.mxu0 %v4074_v31 }
  0xed   :  { %3311 = vmatprep.subr.bf16.mxu0 %v4082_v35 }
  0xf0   :  { %3313 = vmatpush3.bf16.msra.mxu0 %v4086_v37 }
  0xf1   :  { %3315 = vmatprep.subr.bf16.mxu0 %v4088_v39 }
  0xf4   :  { %3317 = vmatpush3.bf16.msra.mxu0 %v4109_v62 }
  0xf5   :  { %3319 = vmatprep.subr.bf16.mxu0 %v4119_v3 }
  0xf8   :  { %3321 = vmatpush3.bf16.msra.mxu0 %v4127_v6 }
  0xf9   :  { %3323 = vmatprep.subr.bf16.mxu0 %v4139_v9 }
  0xfc   :  { %3325 = vmatpush3.bf16.msra.mxu0 %v4147_v12 }
  0xfd   :  { %3327 = vmatprep.subr.bf16.mxu0 %v4159_v15 }
 0x100   :  { %3329 = vmatpush3.bf16.msra.mxu0 %v4167_v19 }
 0x101   :  { %3331 = vmatprep.subr.bf16.mxu0 %v4182_v25 }
 0x104   :  { %3333 = vmatpush3.bf16.msra.mxu0 %v4187_v27 }
 0x105   :  { %3429 = vmatprep.subr.bf16.mxu0 %v4038_v16 }
 0x1ba   :  { %v4194_v28 = vpop.f32.mrb[0].mxu0 }
 0x1bb   :  { %v4196_v29 = vpop.f32.mrb[1].mxu0  ;;  %v955_v32 = vmul.f32 %v4194_v28, %v4194_v28 }
 0x1bc   :  { %v4198_v30 = vpop.f32.mrb[2].mxu0  ;;  %v956_v38 = vmul.f32 %v4196_v29, %v4196_v29 }
 0x1bd   :  { %v941_v33 = vadd.f32 %v4198_v30, %v4194_v28  ;;  %v957_v34 = vmul.f32 %v4198_v30, %v4198_v30  ;;  %v4206_v36 = vpop.f32.mrb[3].mxu0 }
 0x1be   :  { %v948_v40 = vadd.f32 %v4206_v36, %v4196_v29  ;;  %v958_v41 = vmul.f32 %v4206_v36, %v4206_v36 }
 0x1bf   :  { %v942_v42 = vrot.slane %v941_v33, 4  ;;  %v959_v43 = vadd.f32 %v957_v34, %v955_v32  ;;  %v111_v32 = vld [vmem:[%s4470_s12 + $0x30] sm:$0xff] }
 0x1c0   :  { %v949_v44 = vrot.slane %v948_v40, 4  ;;  %v966_v45 = vadd.f32 %v958_v41, %v956_v38 }
 0x1c1   :  { %v943_v46 = vadd.f32 %v942_v42, %v941_v33  ;;  %v960_v47 = vrot.slane %v959_v43, 4  ;;  %v4263_v33 = vpack.c.bf16 %v111_v32, %v109_v26 }
 0x1c2   :  { %v950_v48 = vadd.f32 %v949_v44, %v948_v40  ;;  %v967_v49 = vrot.slane %v966_v45, 4 }
 0x1c3   :  { %v944_v50 = vrot.slane %v943_v46, 2  ;;  %v961_v51 = vadd.f32 %v960_v47, %v959_v43 }
 0x1c4   :  { %v951_v52 = vrot.slane %v950_v48, 2  ;;  %v968_v53 = vadd.f32 %v967_v49, %v966_v45 }
 0x1c5   :  { %v945_v54 = vadd.f32 %v944_v50, %v943_v46  ;;  %v962_v55 = vrot.slane %v961_v51, 2  ;;  %v939_v50 = vld [vmem:[%s4460_s2] sm:$0x1] }
 0x1c6   :  { %v952_v56 = vadd.f32 %v951_v52, %v950_v48  ;;  %v969_v57 = vrot.slane %v968_v53, 2 }
 0x1c7   :  { %v946_v58 = vrot.slane %v945_v54, 1  ;;  %v963_v59 = vadd.f32 %v962_v55, %v961_v51 }
 0x1c8   :  { %v953_v60 = vrot.slane %v952_v56, 1  ;;  %v970_v61 = vadd.f32 %v969_v57, %v968_v53 }
 0x1c9   :  { %v964_v63 = vrot.slane %v963_v59, 1  ;;  %v947_v5 = vadd.f32 %v946_v58, %v945_v54  ;;  %v940_v54 = vld [vmem:[%s4461_s3] sm:$0x1] }
 0x1ca   :  { %v954_v2 = vadd.f32 %v953_v60, %v952_v56  ;;  %v971_v4 = vrot.slane %v970_v61, 1  ;;  %v4297_v56 = vshrl.u32 %v113_v0, 7 }
 0x1cb   :  { %v965_v8 = vadd.f32 %v964_v63, %v963_v59 }
 0x1cc   :  { %1037 = vmatprep.mubr.f32.mxu0 %v954_v2  ;;  %v972_v7 = vadd.f32 %v971_v4, %v970_v61  ;;  %v4300_v57 = vsub.s32 0, %v4297_v56 }
 0x1cd   :  { %1038 = vmatmul.mubr.f32.vlgmr.msra.gmra.mrb[4].mxu0 %v947_v5 }
 0x1ce   :  { %1109 = vmatprep.mubr.f32.mxu1 %v972_v7  ;;  %3431 = vmatpush3.bf16.msra.mxu0 %v4049_v21 }
 0x1cf   :  { %1110 = vmatmul.mubr.f32.vlgmr.msra.gmra.mrb[0].mxu1 %v965_v8  ;;  %3433 = vmatprep.subr.bf16.mxu0 %v4052_v23 }
 0x1d0   :  { %1192 = vmatprep.mubr.f32.mxu1 %v3907_v1  ;;  %3369 = vmatpush1.bf16.msra.mxu1 %v4251_v22 }
 0x1d1   :  { %3371 = vmatprep.subr.bf16.mxu1 %v4253_v24 }
 0x1d2   :  { %3435 = vmatpush3.bf16.msra.mxu0 %v4074_v31 }
 0x1d3   :  { %3437 = vmatprep.subr.bf16.mxu0 %v4082_v35 }
 0x1d4   :  { %3373 = vmatpush1.bf16.msra.mxu1 %v4263_v33 }
 0x1d5   :  { %3375 = vmatprep.subr.bf16.mxu1 %v4240_v14 }
 0x1d6   :  { %3439 = vmatpush3.bf16.msra.mxu0 %v4086_v37 }
 0x1d7   :  { %3441 = vmatprep.subr.bf16.mxu0 %v4088_v39 }
 0x1da   :  { %3443 = vmatpush3.bf16.msra.mxu0 %v4109_v62 }
 0x1db   :  { %3445 = vmatprep.subr.bf16.mxu0 %v4119_v3 }
 0x1de   :  { %3447 = vmatpush3.bf16.msra.mxu0 %v4127_v6 }
 0x1df   :  { %3449 = vmatprep.subr.bf16.mxu0 %v4139_v9 }
 0x1e2   :  { %3451 = vmatpush3.bf16.msra.mxu0 %v4147_v12 }
 0x1e3   :  { %3453 = vmatprep.subr.bf16.mxu0 %v4159_v15 }
 0x1e6   :  { %3455 = vmatpush3.bf16.msra.mxu0 %v4167_v19 }
 0x1e7   :  { %3457 = vmatprep.subr.bf16.mxu0 %v4182_v25 }
 0x1ea   :  { %3459 = vmatpush3.bf16.msra.mxu0 %v4187_v27 }
 0x1eb   :  { %3461 = vmatprep.subr.bf16.mxu0 %v4038_v16 }
 0x2a0   :  { %v3136_v34 = vpop.f32.mrb[4].mxu0 }
 0x2a1   :  { %v3137_v38 = vpop.f32.mrb[5].mxu0 }
 0x2a2   :  { %v3138_v40 = vadd.f32 %v3137_v38, %v3136_v34  ;;  %v3171_v41 = vpop.f32.mrb[0].mxu1 }
 0x2a3   :  { %v3172_v42 = vpop.f32.mrb[1].mxu1 }
 0x2a4   :  { %v1044_v43 = vmul.f32 0.0078125, %v3138_v40  ;;  %v3173_v44 = vadd.f32 %v3172_v42, %v3171_v41 }
 0x2a6   :  { %v1116_v45 = vmul.f32 %v1044_v43, %v1044_v43  ;;  %v1115_v46 = vmul.f32 0.0078125, %v3173_v44 }
 0x2a8   :  { %v1117_v47 = vsub.f32 %v1115_v46, %v1116_v45 }
 0x2aa   :  { %v1118_v48 = vmax.f32 %v1117_v47, 0.0 }
 0x2ac   :  { %v1119_v49 = vadd.f32 1e-05, %v1118_v48 }
 0x2ae   :  { %3823 = vrsqrt.f32 %v1119_v49 }
 0x2b8   :  { %v3824_v51 = vpop.eup %3823 }
 0x2b9   :  { %v1121_v52 = vmul.f32 %v3824_v51, %v939_v50 }
 0x2bb   :  { %2997 = vmatmul.mubr.msk.f32.vlgmr.msra.gmra.mrb[2].mxu1 %vm1124_vm3, %v1121_v52  ;;  %v1122_v53 = vmul.f32 %v1121_v52, %v1044_v43 }
 0x2bc   :  { %3377 = vmatpush1.bf16.msra.mxu1 %v4251_v22  ;;  %1266 = vmatprep.mubr.f32.mxu1 %v3907_v1 }
 0x2bd   :  { %3379 = vmatprep.subr.bf16.mxu1 %v4253_v24  ;;  %v1123_v55 = vsub.f32 %v940_v54, %v1122_v53 }
 0x2c0   :  { %3381 = vmatpush1.bf16.msra.mxu1 %v4263_v33 }
 0x2c1   :  { %3383 = vmatprep.subr.bf16.mxu1 %v4038_v16  ;;  %v3908_v16 = vmov 0.0|0.0  }
 0x2c3   :  { %2998 = vmatmul.mubr.msk.f32.vlgmr.msra.gmra.mrb[4].mxu1 %vm1124_vm3, %v1123_v55  ;;  %v1406_v55 = vld [vmem:[%s4462_s4] sm:$0xff] }
 0x2c4   :  { %3385 = vmatpush3.bf16.msra.mxu1 %v4049_v21 }
 0x2c5   :  { %3387 = vmatprep.subr.bf16.mxu1 %v4052_v23 }
 0x2c8   :  { %3389 = vmatpush3.bf16.msra.mxu1 %v4074_v31 }
 0x2c9   :  { %3391 = vmatprep.subr.bf16.mxu1 %v4082_v35 }
 0x2cc   :  { %3393 = vmatpush3.bf16.msra.mxu1 %v4086_v37 }
 0x2cd   :  { %3395 = vmatprep.subr.bf16.mxu1 %v4088_v39 }
 0x2d0   :  { %3397 = vmatpush3.bf16.msra.mxu1 %v4109_v62 }
 0x2d1   :  { %3399 = vmatprep.subr.bf16.mxu1 %v4119_v3 }
 0x2d4   :  { %3401 = vmatpush3.bf16.msra.mxu1 %v4127_v6 }
 0x2d5   :  { %3403 = vmatprep.subr.bf16.mxu1 %v4139_v9 }
 0x2d8   :  { %3405 = vmatpush3.bf16.msra.mxu1 %v4147_v12 }
 0x2d9   :  { %3407 = vmatprep.subr.bf16.mxu1 %v4159_v15 }
 0x2dc   :  { %3409 = vmatpush3.bf16.msra.mxu1 %v4167_v19 }
 0x2dd   :  { %3411 = vmatprep.subr.bf16.mxu1 %v4182_v25 }
 0x2e0   :  { %3413 = vmatpush3.bf16.msra.mxu1 %v4187_v27 }
 0x2e1   :  { %3414 = vmatprep.subr.bf16.mxu1 %v3908_v16 }
 0x38e   :  { %v1194_v58 = vpop.f32.mrb[2].mxu1 }
 0x38f   :  { %v1276_v59 = vrot.slane %v1194_v58, %v4300_v57  ;;  %v1196_v60 = vpop.f32.mrb[3].mxu1  ;;  %v1407_v58 = vld [vmem:[%s4462_s4 + $0x8] sm:$0xff] }
 0x390   :  { %v1280_v61 = vrot.slane %v1196_v60, %v4300_v57 }
 0x391   :  { %v1281_v63 = vmul.f32 %v1276_v59, %v4194_v28  ;;  %v1283_v2 = vmul.f32 %v1276_v59, %v4198_v30 }
 0x392   :  { %v1282_v4 = vmul.f32 %v1280_v61, %v4196_v29  ;;  %v1284_v5 = vmul.f32 %v1280_v61, %v4206_v36 }
 0x396   :  { %v1268_v7 = vpop.f32.mrb[4].mxu1 }
 0x397   :  { %v1288_v0 = vrot.slane %v1268_v7, %v4300_v57  ;;  %v1270_v8 = vpop.f32.mrb[5].mxu1  ;;  %v1408_v7 = vld [vmem:[%s4462_s4 + $0x10] sm:$0xff] }
 0x398   :  { %v1292_v10 = vrot.slane %v1270_v8, %v4300_v57 }
 0x399   :  { %v1293_v11 = vadd.f32 %v1288_v0, %v1281_v63  ;;  %v1295_v13 = vadd.f32 %v1288_v0, %v1283_v2  ;;  %v3415_v2 = vpack.c.bf16 %v1407_v58, %v1406_v55  ;;  %v1409_v0 = vld [vmem:[%s4462_s4 + $0x18] sm:$0xff]  ;;  %v3693_v55 = vld [vmem:[#allocation6 + $0x144] ss:$8 sps:$4 sm:$0xff]   ;;  %v3691_v58 = vld [vmem:[#allocation6 + $0x140] ss:$8 sps:$4 sm:$0xff]  }
 0x39a   :  { %v1294_v17 = vadd.f32 %v1292_v10, %v1282_v4  ;;  %v1296_v18 = vadd.f32 %v1292_v10, %v1284_v5  ;;  %v3418_v8 = vpack.c.bf16 %v1409_v0, %v1408_v7  ;;  %v3703_v7 = vld [vmem:[#allocation6 + $0x180] ss:$8 sps:$4 sm:$0xff]   ;;  %v3708_v0 = vld [vmem:[#allocation6 + $0x194] ss:$8 sps:$4 sm:$0xff]  }
 0x39b   :  { %v4310_v20 = vmax.f32 %v1293_v11, 0.0  ;;  %v4312_v26 = vmax.f32 %v1295_v13, 0.0 }
 0x39c   :  { %v4314_v28 = vmax.f32 %v1294_v17, 0.0  ;;  %v4316_v30 = vmax.f32 %v1296_v18, 0.0  ;;  %v2999_v18 = vld [vmem:[%s4463_s5] ss:$0 sm:$0xff] }
 0x39d   :  { %v1301_v29 = vrot.slane %v4310_v20, 4  ;;  %v1313_v36 = vrot.slane %v4312_v26, 4 }
 0x39e   :  { %v1307_v32 = vrot.slane %v4314_v28, 4  ;;  %v1319_v34 = vrot.slane %v4316_v30, 4 }
 0x39f   :  { %v1302_v38 = vadd.f32 %v1301_v29, %v4310_v20  ;;  %v1314_v40 = vadd.f32 %v1313_v36, %v4312_v26 }
 0x3a0   :  { %v1308_v41 = vadd.f32 %v1307_v32, %v4314_v28  ;;  %v1320_v42 = vadd.f32 %v1319_v34, %v4316_v30 }
 0x3a1   :  { %v1303_v43 = vrot.slane %v1302_v38, 2  ;;  %v1315_v44 = vrot.slane %v1314_v40, 2 }
 0x3a2   :  { %v1309_v45 = vrot.slane %v1308_v41, 2  ;;  %v1321_v46 = vrot.slane %v1320_v42, 2 }
 0x3a3   :  { %v1304_v47 = vadd.f32 %v1303_v43, %v1302_v38  ;;  %v1316_v48 = vadd.f32 %v1315_v44, %v1314_v40  ;;  %v3681_v38 = vld [vmem:[#allocation6 + $0x104] ss:$8 sps:$4 sm:$0xff]   ;;  %v3001_v40 = vld [vmem:[%s4465_s7] ss:$0 sm:$0xff] }
 0x3a4   :  { %v1310_v49 = vadd.f32 %v1309_v45, %v1308_v41  ;;  %v1322_v50 = vadd.f32 %v1321_v46, %v1320_v42 }
 0x3a5   :  { %v1305_v51 = vrot.slane %v1304_v47, 1  ;;  %v1317_v52 = vrot.slane %v1316_v48, 1 }
 0x3a6   :  { %v1311_v53 = vrot.slane %v1310_v49, 1  ;;  %v1323_v54 = vrot.slane %v1322_v50, 1 }
 0x3a7   :  { %v1306_v59 = vadd.f32 %v1305_v51, %v1304_v47  ;;  %v1318_v60 = vadd.f32 %v1317_v52, %v1316_v48  ;;  %v3679_v47 = vld [vmem:[#allocation6 + $0x100] ss:$8 sps:$4 sm:$0xff]   ;;  %v3684_v48 = vld [vmem:[#allocation6 + $0x114] ss:$8 sps:$4 sm:$0xff]   ;;  %v3687_v51 = vld [vmem:[#allocation6 + $0x124] ss:$8 sps:$4 sm:$0xff]  }
 0x3a8   :  { %v1312_v61 = vadd.f32 %v1311_v53, %v1310_v49  ;;  %v1324_v63 = vadd.f32 %v1323_v54, %v1322_v50  ;;  %v3682_v50 = vld [vmem:[#allocation6 + $0x110] ss:$8 sps:$4 sm:$0xff]   ;;  %v3685_v52 = vld [vmem:[#allocation6 + $0x120] ss:$8 sps:$4 sm:$0xff]   ;;  %v3690_v53 = vld [vmem:[#allocation6 + $0x134] ss:$8 sps:$4 sm:$0xff]  }
 0x3a9   :  { %v1330_v5 = vsel %vm1329_vm4, %v1318_v60, %v1306_v59  ;;  %v3688_v54 = vld [vmem:[#allocation6 + $0x130] ss:$8 sps:$4 sm:$0xff]   ;;  %v3696_v59 = vld [vmem:[#allocation6 + $0x154] ss:$8 sps:$4 sm:$0xff]  }
 0x3aa   :  { %v1331_v4 = vsel %vm1329_vm4, %v1324_v63, %v1312_v61  ;;  %v3694_v60 = vld [vmem:[#allocation6 + $0x150] ss:$8 sps:$4 sm:$0xff]   ;;  %v3699_v61 = vld [vmem:[#allocation6 + $0x164] ss:$8 sps:$4 sm:$0xff]   ;;  %v3697_v63 = vld [vmem:[#allocation6 + $0x160] ss:$8 sps:$4 sm:$0xff]  }
 0x3ab   :  { %1398 = vmatprep.mubr.f32.mxu1 %v1331_v4  ;;  %v3700_v4 = vld [vmem:[#allocation6 + $0x170] ss:$8 sps:$4 sm:$0xff]  }
 0x3ac   :  { %1399 = vmatmul.mubr.f32.vlgmr.msra.gmra.mrb[6].mxu1 %v1330_v5  ;;  %v3705_v5 = vld [vmem:[#allocation6 + $0x184] ss:$8 sps:$4 sm:$0xff]  }
 0x3ad   :  { %3416 = vmatpush3.bf16.msra.mxu1 %v3415_v2  ;;  %3294 = vmatprep.mubr.msk.f32.mxu1 %vm3909_vm5, %v3907_v1  ;;  %v3702_v2 = vld [vmem:[#allocation6 + $0x174] ss:$8 sps:$4 sm:$0xff]  }
 0x3ae   :  { %3417 = vmatprep.subr.bf16.mxu1 %v3908_v16  ;;  %v1491_v16 = vld [vmem:[%s4464_s6] sm:$0x3] }
 0x3b1   :  { %3419 = vmatpush3.bf16.msra.mxu1 %v3418_v8  ;;  %v3706_v8 = vld [vmem:[#allocation6 + $0x190] ss:$8 sps:$4 sm:$0xff]  }
 0x3b2   :  { %3297 = vmatprep.subr.mxu1 %v3907_v1 }
 0x47f   :  { %v3206_v10 = vpop.f32.mrb[6].mxu1 }
 0x480   :  { %v3207_v11 = vpop.f32.mrb[7].mxu1 }
 0x481   :  { %v3208_v13 = vadd.f32 %v3207_v11, %v3206_v10  ;;  %v3711_v10 = vld [vmem:[#allocation6 + $0x1a4] ss:$8 sps:$4 sm:$0xff]   ;;  %v3709_v11 = vld [vmem:[#allocation6 + $0x1a0] ss:$8 sps:$4 sm:$0xff]  }
 0x483   :  { %v1405_v17 = vmul.f32 0.015625, %v3208_v13  ;;  %v3714_v13 = vld [vmem:[#allocation6 + $0x1b4] ss:$8 sps:$4 sm:$0xff]  }
 0x485   :  { %3295 = vmatmul.mubr.msk.f32.vlgmr.msra.gmra.mrb[8].mxu1 %vm1124_vm3, %v1405_v17  ;;  %v3712_v17 = vld [vmem:[#allocation6 + $0x1b0] ss:$8 sps:$4 sm:$0xff]  }
 0x486   :  { %3299 = vmatprep.mubr.msk.f32.mxu1 %vm3909_vm5, %v3907_v1  ;;  %3298 = vmatpush3.msk.msra.mxu1 %vm1503_vm6, %v1491_v16  ;;  %v3717_v16 = vld [vmem:[#allocation6 + $0x1c4] ss:$8 sps:$4 sm:$0xff]  }
 0x487   :  { %3421 = vmatprep.subr.bf16.mxu1 %v4240_v14 }
 0x558   :  { %v1486_v29 = vpop.f32.mrb[8].mxu1 }
 0x559   :  { %v1487_v36 = vadd.f32 %v2999_v18, %v1486_v29  ;;  %v3296_v32 = vpop.f32.mrb[9].mxu1  ;;  %v3715_v18 = vld [vmem:[#allocation6 + $0x1c0] ss:$8 sps:$4 sm:$0xff]   ;;  %v3720_v29 = vld [vmem:[#allocation6 + $0x1d4] ss:$8 sps:$4 sm:$0xff]  }
 0x55a   :  { %v3723_v32 = vld [vmem:[#allocation6 + $0x1e4] ss:$8 sps:$4 sm:$0xff]  }
 0x55b   :  { %v1490_v34 = vmax.f32 %v1487_v36, 0.0  ;;  %v3718_v36 = vld [vmem:[#allocation6 + $0x1d0] ss:$8 sps:$4 sm:$0xff]  }
 0x55d   :  { %3300 = vmatmul.mubr.msk.f32.vlgmr.msra.gmra.mrb[10].mxu1 %vm1499_vm7, %v1490_v34  ;;  %v3721_v34 = vld [vmem:[#allocation6 + $0x1e0] ss:$8 sps:$4 sm:$0xff]  }
 0x55e   :  { %3423 = vmatpush1.bf16.msra.mxu1 %v4251_v22  ;;  %1650 = vmatprep.mubr.f32.mxu1 %v3907_v1 }
 0x55f   :  { %3425 = vmatprep.subr.bf16.mxu1 %v4253_v24 }
 0x562   :  { %3427 = vmatpush1.bf16.msra.mxu1 %v4263_v33 }
 0x563   :  { %1991 = vmatprep.subr.bf16.mxu1 %v3681_v38  ;;  %v3726_v38 = vld [vmem:[#allocation6 + $0x1f4] ss:$8 sps:$4 sm:$0xff]  }
 0x630   :  { %v1573_v41 = vpop.f32.mrb[10].mxu1 }
 0x631   :  { %v1574_v42 = vadd.f32 %v3001_v40, %v1573_v41  ;;  %v3301_v43 = vpop.f32.mrb[11].mxu1  ;;  %v3724_v40 = vld [vmem:[#allocation6 + $0x1f0] ss:$8 sps:$4 sm:$0xff]   ;;  %v3729_v41 = vld [vmem:[#allocation6 + $0x4] ss:$8 sps:$4 sm:$0xff]  }
 0x633   :  { %v3004_v44 = vmul.f32 -1.442695, %v1574_v42  ;;  %v3910_v42 = vmov 1966171168  }
 0x634   :  { %v1661_v43 = vunpack.c.l.s4 %v3910_v42 }
 0x635   :  { %3825 = vpow2.f32 %v3004_v44 }
 0x636   :  { %v1662_v44 = vunpack.c.0.s8 %v1661_v43  ;;  %v3727_v43 = vld [vmem:[#allocation6] ss:$8 sps:$4 sm:$0xff]  }
 0x63f   :  { %v3826_v45 = vpop.eup %3825 }
 0x640   :  { %v1580_v46 = vadd.f32 1.0, %v3826_v45 }
 0x642   :  { %3827 = vrcp.f32 %v1580_v46  ;;  %v1665_v46 = vsub.s32 %v1662_v44, %v4297_v56 }
 0x64c   :  { %v3828_v49 = vpop.eup %3827 }
 0x64d   :  { %3005 = vmatmul.mubr.msk.f32.vlgmr.msra.gmra.mrb[12].mxu1 %vm1124_vm3, %v3828_v49 }
 0x64e   :  { %1992 = vmatpush1.bf16.msra.mxu1 %v3679_v47 }
 0x64f   :  { %1993 = vmatprep.subr.bf16.mxu1 %v3684_v48 }
 0x652   :  { %1994 = vmatpush1.bf16.msra.mxu1 %v3682_v50  ;;  %v1688_v50 = vsub.s32 1, %v4297_v56 }
 0x653   :  { %1995 = vmatprep.subr.bf16.mxu1 %v3687_v51 }
 0x656   :  { %1996 = vmatpush1.bf16.msra.mxu1 %v3685_v52 }
 0x657   :  { %1997 = vmatprep.subr.bf16.mxu1 %v3690_v53 }
 0x65a   :  { %1998 = vmatpush1.bf16.msra.mxu1 %v3688_v54 }
 0x65b   :  { %1999 = vmatprep.subr.bf16.mxu1 %v3693_v55 }
 0x65e   :  { %2000 = vmatpush1.bf16.msra.mxu1 %v3691_v58 }
 0x65f   :  { %2001 = vmatprep.subr.bf16.mxu1 %v3696_v59 }
 0x662   :  { %2002 = vmatpush1.bf16.msra.mxu1 %v3694_v60 }
 0x663   :  { %2003 = vmatprep.subr.bf16.mxu1 %v3699_v61 }
 0x666   :  { %2004 = vmatpush1.bf16.msra.mxu1 %v3697_v63 }
 0x667   :  { %2005 = vmatprep.subr.bf16.mxu1 %v3702_v2 }
 0x66a   :  { %2006 = vmatpush1.bf16.msra.mxu1 %v3700_v4 }
 0x66b   :  { %2007 = vmatprep.subr.bf16.mxu1 %v3705_v5 }
 0x66e   :  { %2008 = vmatpush1.bf16.msra.mxu1 %v3703_v7 }
 0x66f   :  { %2009 = vmatprep.subr.bf16.mxu1 %v3708_v0 }
 0x672   :  { %2010 = vmatpush1.bf16.msra.mxu1 %v3706_v8 }
 0x673   :  { %2011 = vmatprep.subr.bf16.mxu1 %v3711_v10 }
 0x676   :  { %2012 = vmatpush1.bf16.msra.mxu1 %v3709_v11 }
 0x677   :  { %2013 = vmatprep.subr.bf16.mxu1 %v3714_v13 }
 0x67a   :  { %2014 = vmatpush1.bf16.msra.mxu1 %v3712_v17 }
 0x67b   :  { %2015 = vmatprep.subr.bf16.mxu1 %v3717_v16 }
 0x67e   :  { %2016 = vmatpush1.bf16.msra.mxu1 %v3715_v18 }
 0x67f   :  { %2017 = vmatprep.subr.bf16.mxu1 %v3720_v29 }
 0x682   :  { %2018 = vmatpush1.bf16.msra.mxu1 %v3718_v36 }
 0x683   :  { %2019 = vmatprep.subr.bf16.mxu1 %v3723_v32 }
 0x686   :  { %2020 = vmatpush1.bf16.msra.mxu1 %v3721_v34 }
 0x687   :  { %2021 = vmatprep.subr.bf16.mxu1 %v3726_v38 }
 0x68a   :  { %2022 = vmatpush1.bf16.msra.mxu1 %v3724_v40 }
 0x68b   :  { %2194 = vmatprep.subr.bf16.mxu1 %v3729_v41 }
 0x720   :  { %v1652_v45 = vpop.f32.mrb[12].mxu1 }
 0x721   :  { %v1654_v47 = vpop.f32.mrb[13].mxu1 }
 0x722   :  { %v1659_v48 = vcombine.low %v1652_v45, %v1654_v47 }
 0x724   :  { %v1666_v49 = vrot.slane %v1659_v48, %v1665_v46  ;;  %v3732_v48 = vld [vmem:[#allocation6 + $0x14] ss:$8 sps:$4 sm:$0xff]  }
 0x726   :  { %v1667_v51 = vcombine.high %v1666_v49, %v1666_v49  ;;  %v1674_v52 = vrot.slane %v1666_v49, %v1665_v46 }
 0x728   :  { %v1681_v53 = vrot.slane %v1667_v51, %v1665_v46  ;;  %v1685_v54 = vrot.slane %v1674_v52, %v4300_v57  ;;  %v1689_v55 = vrot.slane %v1674_v52, %v1688_v50  ;;  %v3735_v51 = vld [vmem:[#allocation6 + $0x24] ss:$8 sps:$4 sm:$0xff]   ;;  %v3733_v52 = vld [vmem:[#allocation6 + $0x20] ss:$8 sps:$4 sm:$0xff]  }
 0x72a   :  { %v1693_v58 = vrot.slane %v1681_v53, %v4300_v57  ;;  %v1697_v59 = vrot.slane %v1681_v53, %v1688_v50  ;;  %v1702_v60 = vmul.f32 %v1685_v54, %v4310_v20  ;;  %v1703_v61 = vmul.f32 %v1689_v55, %v4314_v28  ;;  %v3730_v50 = vld [vmem:[#allocation6 + $0x10] ss:$8 sps:$4 sm:$0xff]   ;;  %v3738_v53 = vld [vmem:[#allocation6 + $0x34] ss:$8 sps:$4 sm:$0xff]   ;;  %v3741_v55 = vld [vmem:[#allocation6 + $0x44] ss:$8 sps:$4 sm:$0xff]  }
 0x72b   :  { %v3736_v54 = vld [vmem:[#allocation6 + $0x30] ss:$8 sps:$4 sm:$0xff]  }
 0x72c   :  { %v1704_v63 = vmul.f32 %v1693_v58, %v4312_v26  ;;  %v1705_v2 = vmul.f32 %v1697_v59, %v4316_v30  ;;  %v1710_v4 = vrot.slane %v1702_v60, 7  ;;  %v1711_v5 = vrot.slane %v1703_v61, 7  ;;  %v3739_v58 = vld [vmem:[#allocation6 + $0x40] ss:$8 sps:$4 sm:$0xff]   ;;  %v3744_v59 = vld [vmem:[#allocation6 + $0x54] ss:$8 sps:$4 sm:$0xff]  }
 0x72d   :  { %v3742_v60 = vld [vmem:[#allocation6 + $0x50] ss:$8 sps:$4 sm:$0xff]   ;;  %v3747_v61 = vld [vmem:[#allocation6 + $0x64] ss:$8 sps:$4 sm:$0xff]  }
 0x72e   :  { %v1712_v56 = vrot.slane %v1704_v63, 7  ;;  %v1713_v7 = vrot.slane %v1705_v2, 7  ;;  %1718 = vst [vmem:[#allocation2] sm:$0xfe] %v1710_v4  ;;  %1719 = vst [vmem:[#allocation2 + $0x8] sm:$0xfe] %v1711_v5 }
 0x72f   :  { %1720 = vst [vmem:[#allocation2 + $0x10] sm:$0x1] %v1710_v4  ;;  %1721 = vst [vmem:[#allocation2 + $0x18] sm:$0x1] %v1711_v5  ;;  %v3745_v63 = vld [vmem:[#allocation6 + $0x60] ss:$8 sps:$4 sm:$0xff]  }
 0x730   :  { %1722 = vst [vmem:[#allocation2 + $0x20] sm:$0xfe] %v1712_v56  ;;  %1723 = vst [vmem:[#allocation2 + $0x28] sm:$0xfe] %v1713_v7  ;;  %v3750_v2 = vld [vmem:[#allocation6 + $0x74] ss:$8 sps:$4 sm:$0xff]  }
 0x731   :  { %1724 = vst [vmem:[#allocation2 + $0x30] sm:$0x1] %v1712_v56  ;;  %1725 = vst [vmem:[#allocation2 + $0x38] sm:$0x1] %v1713_v7  ;;  %v3748_v4 = vld [vmem:[#allocation6 + $0x70] ss:$8 sps:$4 sm:$0xff]  }
 0x732   :  { %v3753_v5 = vld [vmem:[#allocation6 + $0x84] ss:$8 sps:$4 sm:$0xff]   ;;  %v3751_v56 = vld [vmem:[#allocation6 + $0x80] ss:$8 sps:$4 sm:$0xff]   ;;  %v3756_v7 = vld [vmem:[#allocation6 + $0x94] ss:$8 sps:$4 sm:$0xff]  }
 0x735   :  { %v1765_v0 = vld [vmem:[#allocation2 + $0x8] sm:$0xfe]  ;;  %v1764_v8 = vld [vmem:[#allocation2] sm:$0xfe] }
 0x736   :  { %v1767_v20 = vld [vmem:[#allocation2 + $0x18] sm:$0x1]  ;;  %v1783_v28 = vrot.slane %v1765_v0, 1  ;;  %v1766_v26 = vld [vmem:[#allocation2 + $0x10] sm:$0x1]  ;;  %v1780_v11 = vrot.slane %v1764_v8, 1 }
 0x737   :  { %v1784_v10 = vrot.slane %v1767_v20, 1  ;;  %v1769_v30 = vld [vmem:[#allocation2 + $0x28] sm:$0xfe]  ;;  %v1768_v17 = vld [vmem:[#allocation2 + $0x20] sm:$0xfe]  ;;  %v1781_v36 = vrot.slane %v1766_v26, 1 }
 0x738   :  { %v1771_v13 = vld [vmem:[#allocation2 + $0x38] sm:$0x1]  ;;  %v1789_v16 = vrot.slane %v1769_v30, 1  ;;  %v1770_v29 = vld [vmem:[#allocation2 + $0x30] sm:$0x1]  ;;  %v1786_v32 = vrot.slane %v1768_v17, 1 }
 0x739   :  { %v1790_v18 = vrot.slane %v1771_v13, 1  ;;  %v1787_v34 = vrot.slane %v1770_v29, 1  ;;  %v1785_v38 = vsel %vm206_vm1, %v1783_v28, %v1784_v10  ;;  %v1729_v41 = vld [vmem:[#allocation2 + $0x28] sm:$0xff]  ;;  %v1782_v44 = vsel %vm206_vm1, %v1780_v11, %v1781_v36  ;;  %v3754_v0 = vld [vmem:[#allocation6 + $0x90] ss:$8 sps:$4 sm:$0xff]  }
 0x73a   :  { %v1727_v47 = vld [vmem:[#allocation2 + $0x8] sm:$0xff]  ;;  %v3762_v28 = vld [vmem:[#allocation6 + $0xb4] ss:$8 sps:$4 sm:$0xff]   ;;  %v3760_v10 = vld [vmem:[#allocation6 + $0xb0] ss:$8 sps:$4 sm:$0xff]  }
 0x73b   :  { %v1791_v40 = vsel %vm206_vm1, %v1789_v16, %v1790_v18  ;;  %v1788_v45 = vsel %vm206_vm1, %v1786_v32, %v1787_v34  ;;  %v1731_v49 = vpack.c.bf16 %v1729_v41, %v1727_v47  ;;  %v3759_v20 = vld [vmem:[#allocation6 + $0xa4] ss:$8 sps:$4 sm:$0xff]   ;;  %v3757_v8 = vld [vmem:[#allocation6 + $0xa0] ss:$8 sps:$4 sm:$0xff]   ;;  %v3768_v30 = vld [vmem:[#allocation6 + $0xd4] ss:$8 sps:$4 sm:$0xff]  }
 0x73c   :  { %v1797_v42 = vpack.c.bf16 %v1791_v40, %v1785_v38  ;;  %v1796_v46 = vpack.c.bf16 %v1788_v45, %v1782_v44  ;;  %v3765_v26 = vld [vmem:[#allocation6 + $0xc4] ss:$8 sps:$4 sm:$0xff]   ;;  %v3763_v11 = vld [vmem:[#allocation6 + $0xc0] ss:$8 sps:$4 sm:$0xff]   ;;  %v3766_v13 = vld [vmem:[#allocation6 + $0xd0] ss:$8 sps:$4 sm:$0xff]  }
 0x73d   :  { %v3771_v17 = vld [vmem:[#allocation6 + $0xe4] ss:$8 sps:$4 sm:$0xff]   ;;  %v3769_v16 = vld [vmem:[#allocation6 + $0xe0] ss:$8 sps:$4 sm:$0xff]   ;;  %v2244_v29 = vld [vmem:[#allocation2 + $0x38] sm:$0x3] }
 0x73e   :  { %2023 = vmatprep.mubr.bf16.mxu1 %v1797_v42  ;;  %v2242_v18 = vld [vmem:[#allocation2 + $0x28] sm:$0xfc]  ;;  %v3774_v36 = vld [vmem:[#allocation6 + $0xf4] ss:$8 sps:$4 sm:$0xff]   ;;  %v2240_v34 = vld [vmem:[#allocation2 + $0x18] sm:$0x3] }
 0x73f   :  { %2024 = vmatmul.mubr.bf16.vlgmr.msra.gmra.mrb[16].mxu1 %v1796_v46  ;;  %v2238_v32 = vld [vmem:[#allocation2 + $0x8] sm:$0xfc]  ;;  %v2262_v38 = vrot.slane %v2242_v18, 2  ;;  %v2263_v40 = vrot.slane %v2244_v29, 2  ;;  %v3772_v41 = vld [vmem:[#allocation6 + $0xf0] ss:$8 sps:$4 sm:$0xff]  }
 0x740   :  { %2195 = vmatpush1.bf16.msra.mxu1 %v3727_v43  ;;  %2226 = vmatprep.mubr.bf16.mxu1 %v1731_v49  ;;  %v3777_v42 = vld [vmem:[#allocation6 + $0x204] ss:$8 sps:$4 sm:$0xff]   ;;  %v2256_v43 = vrot.slane %v2238_v32, 2  ;;  %v2257_v44 = vrot.slane %v2240_v34, 2  ;;  %v3814_v18 = vld [vmem:[#allocation6 + $0x2d0] ss:$8 sps:$4 sm:$0xff]  }
 0x741   :  { %2196 = vmatprep.subr.bf16.mxu1 %v3732_v48  ;;  %v1728_v45 = vld [vmem:[#allocation2 + $0x20] sm:$0xff]  ;;  %v2264_v46 = vsel %vm680_vm2, %v2262_v38, %v2263_v40  ;;  %v2243_v32 = vld [vmem:[#allocation2 + $0x30] sm:$0x3]  ;;  %v3822_v38 = vld [vmem:[#allocation6 + $0x2f4] ss:$8 sps:$4 sm:$0xff]  }
 0x742   :  { %v1726_v47 = vld [vmem:[#allocation2] sm:$0xff] }
 0x743   :  { %v3775_v48 = vld [vmem:[#allocation6 + $0x200] ss:$8 sps:$4 sm:$0xff]   ;;  %v1730_v49 = vpack.c.bf16 %v1728_v45, %v1726_v47  ;;  %v3819_v29 = vld [vmem:[#allocation6 + $0x2e4] ss:$8 sps:$4 sm:$0xff]  }
 0x744   :  { %2197 = vmatpush1.bf16.msra.mxu1 %v3730_v50  ;;  %v2258_v50 = vsel %vm680_vm2, %v2256_v43, %v2257_v44  ;;  %v3817_v34 = vld [vmem:[#allocation6 + $0x2e0] ss:$8 sps:$4 sm:$0xff]   ;;  %v2260_v43 = vrot.slane %v2243_v32, 2  ;;  %v3820_v44 = vld [vmem:[#allocation6 + $0x2f0] ss:$8 sps:$4 sm:$0xff]  }
 0x745   :  { %2198 = vmatprep.subr.bf16.mxu1 %v3735_v51  ;;  %v3780_v51 = vld [vmem:[#allocation6 + $0x214] ss:$8 sps:$4 sm:$0xff]   ;;  %v2237_v40 = vld [vmem:[#allocation2] sm:$0xfc] }
 0x746   :  { %v2253_v45 = vrot.slane %v2237_v40, 2 }
 0x748   :  { %2199 = vmatpush1.bf16.msra.mxu1 %v3733_v52  ;;  %v2270_v52 = vpack.c.bf16 %v2264_v46, %v2258_v50 }
 0x749   :  { %2200 = vmatprep.subr.bf16.mxu1 %v3738_v53  ;;  %v3778_v53 = vld [vmem:[#allocation6 + $0x210] ss:$8 sps:$4 sm:$0xff]  }
 0x74c   :  { %2201 = vmatpush1.bf16.msra.mxu1 %v3736_v54  ;;  %v3783_v54 = vld [vmem:[#allocation6 + $0x224] ss:$8 sps:$4 sm:$0xff]  }
 0x74d   :  { %2202 = vmatprep.subr.bf16.mxu1 %v3741_v55  ;;  %v3781_v55 = vld [vmem:[#allocation6 + $0x220] ss:$8 sps:$4 sm:$0xff]  }
 0x750   :  { %2203 = vmatpush1.bf16.msra.mxu1 %v3739_v58  ;;  %v3786_v58 = vld [vmem:[#allocation6 + $0x234] ss:$8 sps:$4 sm:$0xff]  }
 0x751   :  { %2204 = vmatprep.subr.bf16.mxu1 %v3744_v59  ;;  %v3784_v59 = vld [vmem:[#allocation6 + $0x230] ss:$8 sps:$4 sm:$0xff]  }
 0x754   :  { %2205 = vmatpush1.bf16.msra.mxu1 %v3742_v60  ;;  %v3789_v60 = vld [vmem:[#allocation6 + $0x244] ss:$8 sps:$4 sm:$0xff]  }
 0x755   :  { %2206 = vmatprep.subr.bf16.mxu1 %v3747_v61  ;;  %v3787_v61 = vld [vmem:[#allocation6 + $0x240] ss:$8 sps:$4 sm:$0xff]  }
 0x758   :  { %2207 = vmatpush1.bf16.msra.mxu1 %v3745_v63  ;;  %v3792_v63 = vld [vmem:[#allocation6 + $0x254] ss:$8 sps:$4 sm:$0xff]  }
 0x759   :  { %2208 = vmatprep.subr.bf16.mxu1 %v3750_v2  ;;  %v3790_v2 = vld [vmem:[#allocation6 + $0x250] ss:$8 sps:$4 sm:$0xff]  }
 0x75c   :  { %2209 = vmatpush1.bf16.msra.mxu1 %v3748_v4  ;;  %v3795_v4 = vld [vmem:[#allocation6 + $0x264] ss:$8 sps:$4 sm:$0xff]  }
 0x75d   :  { %2210 = vmatprep.subr.bf16.mxu1 %v3753_v5  ;;  %v3793_v5 = vld [vmem:[#allocation6 + $0x260] ss:$8 sps:$4 sm:$0xff]  }
 0x760   :  { %2211 = vmatpush1.bf16.msra.mxu1 %v3751_v56  ;;  %v3798_v56 = vld [vmem:[#allocation6 + $0x274] ss:$8 sps:$4 sm:$0xff]  }
 0x761   :  { %2212 = vmatprep.subr.bf16.mxu1 %v3756_v7  ;;  %v3796_v7 = vld [vmem:[#allocation6 + $0x270] ss:$8 sps:$4 sm:$0xff]  }
 0x764   :  { %2213 = vmatpush1.bf16.msra.mxu1 %v3754_v0  ;;  %v3801_v0 = vld [vmem:[#allocation6 + $0x284] ss:$8 sps:$4 sm:$0xff]  }
 0x765   :  { %2214 = vmatprep.subr.bf16.mxu1 %v3759_v20  ;;  %v3799_v20 = vld [vmem:[#allocation6 + $0x280] ss:$8 sps:$4 sm:$0xff]  }
 0x768   :  { %2215 = vmatpush1.bf16.msra.mxu1 %v3757_v8  ;;  %v3804_v8 = vld [vmem:[#allocation6 + $0x294] ss:$8 sps:$4 sm:$0xff]  }
 0x769   :  { %2216 = vmatprep.subr.bf16.mxu1 %v3762_v28  ;;  %v3802_v28 = vld [vmem:[#allocation6 + $0x290] ss:$8 sps:$4 sm:$0xff]  }
 0x76c   :  { %2217 = vmatpush1.bf16.msra.mxu1 %v3760_v10  ;;  %v3807_v10 = vld [vmem:[#allocation6 + $0x2a4] ss:$8 sps:$4 sm:$0xff]  }
 0x76d   :  { %2218 = vmatprep.subr.bf16.mxu1 %v3765_v26  ;;  %v3805_v26 = vld [vmem:[#allocation6 + $0x2a0] ss:$8 sps:$4 sm:$0xff]  }
 0x770   :  { %2219 = vmatpush1.bf16.msra.mxu1 %v3763_v11  ;;  %v3810_v11 = vld [vmem:[#allocation6 + $0x2b4] ss:$8 sps:$4 sm:$0xff]  }
 0x771   :  { %2220 = vmatprep.subr.bf16.mxu1 %v3768_v30  ;;  %v3808_v30 = vld [vmem:[#allocation6 + $0x2b0] ss:$8 sps:$4 sm:$0xff]  }
 0x774   :  { %2221 = vmatpush1.bf16.msra.mxu1 %v3766_v13  ;;  %v3813_v13 = vld [vmem:[#allocation6 + $0x2c4] ss:$8 sps:$4 sm:$0xff]  }
 0x775   :  { %2222 = vmatprep.subr.bf16.mxu1 %v3771_v17  ;;  %v3811_v17 = vld [vmem:[#allocation6 + $0x2c0] ss:$8 sps:$4 sm:$0xff]  }
 0x778   :  { %2223 = vmatpush1.bf16.msra.mxu1 %v3769_v16  ;;  %v3816_v16 = vld [vmem:[#allocation6 + $0x2d4] ss:$8 sps:$4 sm:$0xff]  }
 0x779   :  { %2224 = vmatprep.subr.bf16.mxu1 %v3774_v36  ;;  %v2241_v36 = vld [vmem:[#allocation2 + $0x20] sm:$0xfc] }
 0x77c   :  { %2225 = vmatpush1.bf16.msra.mxu1 %v3772_v41  ;;  %v2239_v41 = vld [vmem:[#allocation2 + $0x10] sm:$0x3] }
 0x77d   :  { %2464 = vmatprep.subr.bf16.mxu1 %v3777_v42  ;;  %v2259_v42 = vrot.slane %v2241_v36, 2  ;;  %v2254_v46 = vrot.slane %v2239_v41, 2 }
 0x77f   :  { %2227 = vmatmul.mubr.bf16.vlgmr.msra.gmra.mrb[16].mxu1 %v1730_v49  ;;  %v2261_v47 = vsel %vm680_vm2, %v2259_v42, %v2260_v43 }
 0x780   :  { %2465 = vmatpush1.bf16.msra.mxu1 %v3775_v48  ;;  %2496 = vmatprep.mubr.bf16.mxu1 %v2270_v52  ;;  %v2255_v48 = vsel %vm680_vm2, %v2253_v45, %v2254_v46 }
 0x781   :  { %2466 = vmatprep.subr.bf16.mxu1 %v3780_v51  ;;  %v2269_v49 = vpack.c.bf16 %v2261_v47, %v2255_v48 }
 0x784   :  { %2467 = vmatpush1.bf16.msra.mxu1 %v3778_v53 }
 0x785   :  { %2468 = vmatprep.subr.bf16.mxu1 %v3783_v54 }
 0x788   :  { %2469 = vmatpush1.bf16.msra.mxu1 %v3781_v55 }
 0x789   :  { %2470 = vmatprep.subr.bf16.mxu1 %v3786_v58 }
 0x78c   :  { %2471 = vmatpush1.bf16.msra.mxu1 %v3784_v59 }
 0x78d   :  { %2472 = vmatprep.subr.bf16.mxu1 %v3789_v60 }
 0x790   :  { %2473 = vmatpush1.bf16.msra.mxu1 %v3787_v61 }
 0x791   :  { %2474 = vmatprep.subr.bf16.mxu1 %v3792_v63 }
 0x794   :  { %2475 = vmatpush1.bf16.msra.mxu1 %v3790_v2 }
 0x795   :  { %2476 = vmatprep.subr.bf16.mxu1 %v3795_v4 }
 0x798   :  { %2477 = vmatpush1.bf16.msra.mxu1 %v3793_v5 }
 0x799   :  { %2478 = vmatprep.subr.bf16.mxu1 %v3798_v56 }
 0x79c   :  { %2479 = vmatpush1.bf16.msra.mxu1 %v3796_v7 }
 0x79d   :  { %2480 = vmatprep.subr.bf16.mxu1 %v3801_v0 }
 0x7a0   :  { %2481 = vmatpush1.bf16.msra.mxu1 %v3799_v20 }
 0x7a1   :  { %2482 = vmatprep.subr.bf16.mxu1 %v3804_v8 }
 0x7a4   :  { %2483 = vmatpush1.bf16.msra.mxu1 %v3802_v28 }
 0x7a5   :  { %2484 = vmatprep.subr.bf16.mxu1 %v3807_v10 }
 0x7a8   :  { %2485 = vmatpush1.bf16.msra.mxu1 %v3805_v26 }
 0x7a9   :  { %2486 = vmatprep.subr.bf16.mxu1 %v3810_v11 }
 0x7ac   :  { %2487 = vmatpush1.bf16.msra.mxu1 %v3808_v30 }
 0x7ad   :  { %2488 = vmatprep.subr.bf16.mxu1 %v3813_v13 }
 0x7b0   :  { %2489 = vmatpush1.bf16.msra.mxu1 %v3811_v17 }
 0x7b1   :  { %2490 = vmatprep.subr.bf16.mxu1 %v3816_v16 }
 0x7b4   :  { %2491 = vmatpush1.bf16.msra.mxu1 %v3814_v18 }
 0x7b5   :  { %2492 = vmatprep.subr.bf16.mxu1 %v3819_v29 }
 0x7b8   :  { %2493 = vmatpush1.bf16.msra.mxu1 %v3817_v34 }
 0x7b9   :  { %2494 = vmatprep.subr.bf16.mxu1 %v3822_v38 }
 0x7bc   :  { %2495 = vmatpush1.bf16.msra.mxu1 %v3820_v44 }
 0x7bd   :  { %3493 = vmatprep.subr.bf16.mxu1 %v4240_v14 }
 0x7bf   :  { %2497 = vmatmul.mubr.bf16.vlgmr.msra.gmra.mrb[16].mxu1 %v2269_v49 }
 0x7c0   :  { %3495 = vmatpush1.bf16.msra.mxu1 %v4251_v22  ;;  %2762 = vmatprep.mubr.f32.mxu1 %v3907_v1 }
 0x7c1   :  { %3497 = vmatprep.subr.bf16.mxu1 %v4253_v24 }
 0x7c4   :  { %3499 = vmatpush1.bf16.msra.mxu1 %v4263_v33 }
 0x892   :  { %v4378_v50 = vpop.f32.mrb[16].mxu1 }
 0x893   :  { %v4380_v51 = vpop.f32.mrb[17].mxu1  ;;  %v2527_v53 = vmul.f32 %v4378_v50, %v4378_v50 }
 0x894   :  { %v4382_v52 = vpop.f32.mrb[18].mxu1  ;;  %v2528_v59 = vmul.f32 %v4380_v51, %v4380_v51 }
 0x895   :  { %v2513_v54 = vadd.f32 %v4382_v52, %v4378_v50  ;;  %v2529_v55 = vmul.f32 %v4382_v52, %v4382_v52  ;;  %v4390_v58 = vpop.f32.mrb[19].mxu1 }
 0x896   :  { %v2520_v60 = vadd.f32 %v4390_v58, %v4380_v51  ;;  %v2530_v61 = vmul.f32 %v4390_v58, %v4390_v58 }
 0x897   :  { %v2514_v63 = vrot.slane %v2513_v54, 4  ;;  %v2531_v2 = vadd.f32 %v2529_v55, %v2527_v53  ;;  %v2867_v55 = vld [vmem:[%s4458_s0] sm:$0xff] }
 0x898   :  { %v2521_v4 = vrot.slane %v2520_v60, 4  ;;  %v2538_v5 = vadd.f32 %v2530_v61, %v2528_v59  ;;  %v2869_v59 = vld [vmem:[%s4458_s0 + $0x10] sm:$0xff] }
 0x899   :  { %v2515_v56 = vadd.f32 %v2514_v63, %v2513_v54  ;;  %v2532_v32 = vrot.slane %v2531_v2, 4 }
 0x89a   :  { %v2522_v7 = vadd.f32 %v2521_v4, %v2520_v60  ;;  %v2539_v0 = vrot.slane %v2538_v5, 4 }
 0x89b   :  { %v2516_v20 = vrot.slane %v2515_v56, 2  ;;  %v2533_v34 = vadd.f32 %v2532_v32, %v2531_v2 }
 0x89c   :  { %v2523_v8 = vrot.slane %v2522_v7, 2  ;;  %v2540_v28 = vadd.f32 %v2539_v0, %v2538_v5 }
 0x89d   :  { %v2517_v10 = vadd.f32 %v2516_v20, %v2515_v56 }
 0x89e   :  { %v2524_v26 = vadd.f32 %v2523_v8, %v2522_v7  ;;  %v2541_v11 = vrot.slane %v2540_v28, 2 }
 0x89f   :  { %v2518_v30 = vrot.slane %v2517_v10, 1 }
 0x8a0   :  { %v2525_v13 = vrot.slane %v2524_v26, 1  ;;  %v2542_v17 = vadd.f32 %v2541_v11, %v2540_v28 }
 0x8a1   :  { %v2519_v29 = vadd.f32 %v2518_v30, %v2517_v10 }
 0x8a2   :  { %v2526_v16 = vadd.f32 %v2525_v13, %v2524_v26  ;;  %v2543_v18 = vrot.slane %v2542_v17, 1 }
 0x8a4   :  { %2609 = vmatprep.mubr.f32.mxu0 %v2526_v16  ;;  %v2544_v36 = vadd.f32 %v2543_v18, %v2542_v17 }
 0x8a5   :  { %2610 = vmatmul.mubr.f32.vlgmr.msra.gmra.mrb[6].mxu0 %v2519_v29 }
 0x8a6   :  { %3463 = vmatpush3.bf16.msra.mxu0 %v4049_v21  ;;  %2680 = vmatprep.mubr.f32.mxu0 %v2544_v36  ;;  %v2534_v21 = vrot.slane %v2533_v34, 2 }
 0x8a7   :  { %3465 = vmatprep.subr.bf16.mxu0 %v4052_v23 }
 0x8a8   :  { %v2535_v23 = vadd.f32 %v2534_v21, %v2533_v34 }
 0x8aa   :  { %3467 = vmatpush3.bf16.msra.mxu0 %v4074_v31  ;;  %v2536_v31 = vrot.slane %v2535_v23, 1 }
 0x8ab   :  { %3469 = vmatprep.subr.bf16.mxu0 %v4082_v35 }
 0x8ac   :  { %v2537_v35 = vadd.f32 %v2536_v31, %v2535_v23 }
 0x8ae   :  { %3471 = vmatpush3.bf16.msra.mxu0 %v4086_v37 }
 0x8af   :  { %3473 = vmatprep.subr.bf16.mxu0 %v4088_v39 }
 0x8b2   :  { %3475 = vmatpush3.bf16.msra.mxu0 %v4109_v62 }
 0x8b3   :  { %3477 = vmatprep.subr.bf16.mxu0 %v4119_v3 }
 0x8b6   :  { %3479 = vmatpush3.bf16.msra.mxu0 %v4127_v6 }
 0x8b7   :  { %3481 = vmatprep.subr.bf16.mxu0 %v4139_v9 }
 0x8ba   :  { %3483 = vmatpush3.bf16.msra.mxu0 %v4147_v12 }
 0x8bb   :  { %3485 = vmatprep.subr.bf16.mxu0 %v4159_v15 }
 0x8be   :  { %3487 = vmatpush3.bf16.msra.mxu0 %v4167_v19 }
 0x8bf   :  { %3489 = vmatprep.subr.bf16.mxu0 %v4182_v25 }
 0x8c2   :  { %3491 = vmatpush3.bf16.msra.mxu0 %v4187_v27 }
 0x8c3   :  { %3501 = vmatprep.subr.bf16.mxu0 %v4240_v14 }
 0x8c5   :  { %2681 = vmatmul.mubr.f32.vlgmr.msra.gmra.mrb[8].mxu0 %v2537_v35 }
 0x8c6   :  { %3503 = vmatpush1.bf16.msra.mxu0 %v4251_v22  ;;  %2836 = vmatprep.mubr.f32.mxu0 %v3907_v1  ;;  %v2511_v1 = vld [vmem:[%s4467_s9] sm:$0x1] }
 0x8c7   :  { %3505 = vmatprep.subr.bf16.mxu0 %v4253_v24 }
 0x8ca   :  { %3507 = vmatpush1.bf16.msra.mxu0 %v4263_v33  ;;  %v2512_v33 = vld [vmem:[%s4468_s10] sm:$0x1] }
 0x978   :  { %v3248_v37 = vpop.f32.mrb[6].mxu0 }
 0x979   :  { %v3249_v39 = vpop.f32.mrb[7].mxu0 }
 0x97a   :  { %v3250_v62 = vadd.f32 %v3249_v39, %v3248_v37 }
 0x97c   :  { %v2615_v3 = vmul.f32 0.0078125, %v3250_v62 }
 0x97e   :  { %v2687_v15 = vmul.f32 %v2615_v3, %v2615_v3 }
 0x998   :  { %v3283_v6 = vpop.f32.mrb[8].mxu0 }
 0x999   :  { %v3284_v9 = vpop.f32.mrb[9].mxu0 }
 0x99a   :  { %v3285_v12 = vadd.f32 %v3284_v9, %v3283_v6 }
 0x99c   :  { %v2686_v19 = vmul.f32 0.0078125, %v3285_v12 }
 0x99e   :  { %v2688_v25 = vsub.f32 %v2686_v19, %v2687_v15 }
 0x9a0   :  { %v2689_v27 = vmax.f32 %v2688_v25, 0.0 }
 0x9a2   :  { %v2690_v14 = vadd.f32 1e-05, %v2689_v27 }
 0x9a4   :  { %3829 = vrsqrt.f32 %v2690_v14 }
 0x9ae   :  { %v3830_v22 = vpop.eup %3829 }
 0x9af   :  { %v2692_v24 = vmul.f32 %v3830_v22, %v2511_v1 }
 0x9b1   :  { %3102 = vmatmul.mubr.msk.f32.vlgmr.msra.gmra.mrb[14].mxu1 %vm1124_vm3, %v2692_v24  ;;  %v2693_v38 = vmul.f32 %v2692_v24, %v2615_v3 }
 0x9b3   :  { %v2694_v40 = vsub.f32 %v2512_v33, %v2693_v38 }
 0x9b5   :  { %3103 = vmatmul.mubr.msk.f32.vlgmr.msra.gmra.mrb[10].mxu0 %vm1124_vm3, %v2694_v40 }
 0xa84   :  { %v2764_v41 = vpop.f32.mrb[14].mxu1 }
 0xa85   :  { %v2846_v42 = vrot.slane %v2764_v41, %v4300_v57  ;;  %v2766_v43 = vpop.f32.mrb[15].mxu1 }
 0xa86   :  { %v2850_v44 = vrot.slane %v2766_v43, %v4300_v57 }
 0xa87   :  { %v2851_v45 = vmul.f32 %v2846_v42, %v4378_v50  ;;  %v2853_v46 = vmul.f32 %v2846_v42, %v4382_v52 }
 0xa88   :  { %v2852_v47 = vmul.f32 %v2850_v44, %v4380_v51  ;;  %v2854_v48 = vmul.f32 %v2850_v44, %v4390_v58  ;;  %v2838_v49 = vpop.f32.mrb[10].mxu0  ;;  %v2868_v51 = vld [vmem:[%s4458_s0 + $0x8] sm:$0xff]  ;;  %v2870_v58 = vld [vmem:[%s4458_s0 + $0x18] sm:$0xff] }
 0xa89   :  { %v2858_v53 = vrot.slane %v2838_v49, %v4300_v57  ;;  %v2840_v54 = vpop.f32.mrb[11].mxu0 }
 0xa8a   :  { %v2862_v50 = vrot.slane %v2840_v54, %v4300_v57 }
 0xa8b   :  { %v2863_v60 = vadd.f32 %v2858_v53, %v2851_v45  ;;  %v2865_v52 = vadd.f32 %v2858_v53, %v2853_v46 }
 0xa8c   :  { %v2864_v61 = vadd.f32 %v2862_v50, %v2852_v47  ;;  %v2866_v63 = vadd.f32 %v2862_v50, %v2854_v48 }
 0xa8d   :  { %v2871_v2 = vadd.f32 %v2867_v55, %v2863_v60  ;;  %v2873_v4 = vadd.f32 %v2869_v59, %v2865_v52 }
 0xa8e   :  { %v2872_v5 = vadd.f32 %v2868_v51, %v2864_v61  ;;  %v2874_v56 = vadd.f32 %v2870_v58, %v2866_v63 }
 0xa8f   :  { %v2875_v7 = vmax.f32 %v2871_v2, 0.0  ;;  %v2877_v57 = vmax.f32 %v2873_v4, 0.0 }
 0xa90   :  { %v2876_v0 = vmax.f32 %v2872_v5, 0.0  ;;  %v2878_v20 = vmax.f32 %v2874_v56, 0.0 }
 0xa91   :  { %2879 = vst [vmem:[#allocation8] sm:$0xff] %v2875_v7  ;;  %2881 = vst [vmem:[#allocation8 + $0x10] sm:$0xff] %v2877_v57 }
 0xa92   :  { %2880 = vst [vmem:[#allocation8 + $0x8] sm:$0xff] %v2876_v0  ;;  %2882 = vst [vmem:[#allocation8 + $0x18] sm:$0xff] %v2878_v20 }
 0xa93   :  { %3886 = shalt.err (!%p3883_p6)
}
 0xa94   :  { %s3887_s3 = scalar_lea.hbm %s4471_s13, 512 }
 0xa95   :  { %p3888_p7 = scmp.ne.s32.totalorder %s4471_s13, %s3887_s3  ;;  %p3891_p8 = scmp.lt.u32.totalorder %s3887_s3, %s4471_s13 }
 0xa97   :  { %p3893_p9 = pnand %p3891_p8, %p3888_p7 }
 0xa99   :  { %3896 = shalt.err (!%p3893_p9)
}
 0xa9a   :  { %s3912_s1 = smov 256   ;;  %s3913_s26 = smov 16  }
 0xa9b   :  { %2894 = dma.vmem_to_hbm [thread:$0]  %s2889_s28, 512, %s4471_s13, [#allocation5], %s3912_s1, %s3912_s1, %s3913_s26  }
 0xa9c   :  { %3901 = dma.done.wait [#allocation5], 512  }
 0xa9d   :  { %3902 = vsyncadd [#allocation5], 4294966784 }
 0xa9e   :  { %2898 = vsyncpa [#allocation4], 1 }
 0xa9f   :  { %2899 = vsyncpa [#allocation7], 1 }
 0xaa0   :  { %2900 = vsyncpa [#allocation5], 1 }

</bundles_post_ra>
